<compile_context>
chip_gen: v6e
topology: v6e:2x2x1
jax: 0.10.0
libtpu: 0.0.40
codegen_flags: <defaults>
</compile_context>

<pallas_src>
import functools

import numpy as np
import jax
import jax.numpy as jnp
from jax import lax
from jax.experimental import pallas as pl
from jax.experimental.pallas import tpu as pltpu


def _dense_block_kernel(x_ref, *refs, layer_channels, layer_groups, growth,
                        H, W, dilation, center):
    num_layers = len(layer_channels)
    param_refs = refs[:4 * num_layers]
    o_ref = refs[4 * num_layers]
    pad_ref, slab_ref = refs[4 * num_layers + 1:]

    HW = H * W
    d = dilation
    c_in = layer_channels[0]
    pad_rows = pad_ref.shape[0]

    # Seed the resident dense-activation slab (== the output block) with the
    # input channels; every layer appends `growth` rows below.
    o_ref[0, 0:c_in, :] = x_ref[0].astype(o_ref.dtype)

    # Zero the halo strips (H-boundary zeros) for all rows and the interior of
    # the group-padding rows (>= c_in).  Layer l fully overwrites interior rows
    # [0, c_l) before reading them and no layer writes rows >= its own c_l, so
    # one zeroing per grid step keeps every slab-window read well defined (and
    # stays correct under megacore partitioning of the batch axis).
    pad_ref[:, 0:center] = jnp.zeros((pad_rows, center), pad_ref.dtype)
    pad_ref[:, center + HW:center + HW + center] = jnp.zeros(
        (pad_rows, center), pad_ref.dtype)
    if pad_rows > c_in:
        pad_ref[c_in:pad_rows, center:center + HW] = jnp.zeros(
            (pad_rows - c_in, HW), pad_ref.dtype)

    # W-boundary validity masks for the two shifted horizontal taps, built ONCE
    # (JAX does not CSE broadcast_in_dim) as 0/1 multiplicative masks and sliced
    # per layer.  The H boundary is handled by the zeroed halo strips.
    wcol = lax.broadcasted_iota(jnp.int32, (pad_rows, HW), 1) % W
    col_mask = {0: (wcol >= d).astype(jnp.float32),      # kw = 0 reads col - d
                2: (wcol < W - d).astype(jnp.float32)}   # kw = 2 reads col + d

    for l in range(num_layers):
        c_l = layer_channels[l]
        g_l = layer_groups[l]            # c_l padded to the sublane tile
        scale_ref, shift_ref, bias_ref, w_ref = param_refs[4 * l:4 * l + 4]

        # Folded BatchNorm (inference) + ReLU in f32; scale/shift broadcast per
        # sublane.
        x_l = o_ref[0, 0:c_l, :].astype(jnp.float32)
        a = jnp.maximum(x_l * scale_ref[...] + shift_ref[...], 0.0)

        # Stage activation into the H-padded flat buffer (lane-aligned store).
        pad_ref[0:c_l, center:center + HW] = a

        # im2col slab: 9 shifted windows, each a g_l-row group so every store
        # starts on a sublane-tile boundary (full-width vst, no masked stores).
        # Rows [c_l, g_l) of each group are zeros (zeroed padding rows above).
        for kh in range(3):
            for kw in range(3):
                off = center + (kh - 1) * d * W + (kw - 1) * d
                win = pad_ref[0:g_l, off:off + HW]
                if kw != 1:              # only horizontal shifts wrap across rows
                    win = win * col_mask[kw][0:g_l]
                r0 = (kh * 3 + kw) * g_l
                slab_ref[r0:r0 + g_l, :] = win.astype(slab_ref.dtype)

        # Whole 3x3 conv as ONE MXU contraction (f32 accumulation), then the
        # bias as a cheap (growth, HW) VPU broadcast add.
        y = jnp.dot(w_ref[...], slab_ref[0:9 * g_l, :],
                    preferred_element_type=jnp.float32) + bias_ref[...]

        # Dense concat == append the new channels to the resident output slab.
        o_ref[0, c_l:c_l + growth, :] = y.astype(o_ref.dtype)


def dense_block(x_nchw, params, dilation=1, mxu_dtype=jnp.bfloat16):
    """Fused DenseBlock forward.  x_nchw: (N, C_in, H, W) -> (N, C_total, H, W).

    mxu_dtype sets the dtype of the MXU operands (im2col slab + conv weights);
    accumulation and all BN/ReLU math stay f32.
    """
    N, c_in, H, W = x_nchw.shape
    HW = H * W
    num_layers = len(params)
    growth = params[0]["w"].shape[-1]
    c_total = c_in + num_layers * growth
    layer_channels = tuple(c_in + l * growth for l in range(num_layers))
    d = dilation

    # Sublane tile for the MXU-operand dtype: 8 rows (f32) / 16 rows (bf16).
    sub = 8 * (4 // jnp.dtype(mxu_dtype).itemsize)
    layer_groups = tuple(((c + sub - 1) // sub) * sub for c in layer_channels)
    g_max = layer_groups[-1]

    # Halo of (d rows + d cols) on each side of the flattened spatial axis,
    # rounded up to a lane multiple so the interior store stays lane-aligned.
    center = ((d * W + d + 127) // 128) * 128
    pad_w = HW + 2 * center

    inputs = [x_nchw.reshape(N, c_in, HW)]
    in_specs = [pl.BlockSpec((1, c_in, HW), lambda n: (n, 0, 0))]
    for p, c_l, g_l in zip(params, layer_channels, layer_groups):
        # Every layer must share the same growth rate / channel progression,
        # otherwise the resident-slab channel indexing would be silently wrong.
        assert p["w"].shape == (3, 3, c_l, growth), (p["w"].shape, c_l, growth)
        assert p["b"].shape == (growth,)
        assert p["scale"].shape == (c_l,) and p["shift"].shape == (c_l,)
        # (3,3,Cin,Cout) HWIO -> (Cout, 9, Cin), channel axis zero-padded to the
        # sublane group size so columns line up with the padded slab rows.
        w_mat = jnp.transpose(p["w"], (3, 0, 1, 2)).reshape(growth, 9, c_l)
        w_pad = jnp.pad(w_mat, ((0, 0), (0, 0), (0, g_l - c_l)))
        inputs += [p["scale"].reshape(c_l, 1).astype(jnp.float32),
                   p["shift"].reshape(c_l, 1).astype(jnp.float32),
                   p["b"].reshape(growth, 1).astype(jnp.float32),
                   w_pad.reshape(growth, 9 * g_l).astype(mxu_dtype)]
        # Constant index_maps -> these stay VMEM-resident across grid steps.
        # (They are KB-scale so default double-buffering costs ~nothing here;
        # drop to single-buffering once spatial tiling multiplies grid steps.)
        in_specs += [pl.BlockSpec((c_l, 1), lambda n: (0, 0)),
                     pl.BlockSpec((c_l, 1), lambda n: (0, 0)),
                     pl.BlockSpec((growth, 1), lambda n: (0, 0)),
                     pl.BlockSpec((growth, 9 * g_l), lambda n: (0, 0))]

    kernel = functools.partial(
        _dense_block_kernel, layer_channels=layer_channels,
        layer_groups=layer_groups, growth=growth, H=H, W=W, dilation=d,
        center=center)

    out = pl.pallas_call(
        kernel,
        out_shape=jax.ShapeDtypeStruct((N, c_total, HW), x_nchw.dtype),
        grid_spec=pltpu.PrefetchScalarGridSpec(
            num_scalar_prefetch=0,
            grid=(N,),
            in_specs=in_specs,
            out_specs=pl.BlockSpec((1, c_total, HW), lambda n: (n, 0, 0)),
            scratch_shapes=[
                pltpu.VMEM((g_max, pad_w), jnp.float32),   # padded activations
                pltpu.VMEM((9 * g_max, HW), mxu_dtype),    # im2col slab
            ],
        ),
        compiler_params=pltpu.CompilerParams(
            dimension_semantics=("parallel",)),
    )(*inputs)
    return out.reshape(N, c_total, H, W)


def dense_block_ref(x_nchw, params, dilation=1):
    """Pure-JAX reference for correctness checking."""
    x = jnp.transpose(x_nchw, (0, 2, 3, 1))
    for p in params:
        a = jnp.maximum(x * p["scale"] + p["shift"], 0.0)
        y = lax.conv_general_dilated(
            a, p["w"], (1, 1), "SAME", rhs_dilation=(dilation, dilation),
            dimension_numbers=("NHWC", "HWIO", "NHWC")) + p["b"]
        x = jnp.concatenate([x, y], axis=-1)
    return jnp.transpose(x, (0, 3, 1, 2))


def init_params(key, num_convs, in_channels, growth_rate):
    """Deterministic synthetic parameters (shapes match the PyTorch module)."""
    # TODO(synk): BatchNorm2d training-mode batch statistics not implemented;
    # eval-mode semantics with folded running stats are used instead.
    eps = 1e-5
    params = []
    c = in_channels
    for _ in range(num_convs):
        key, k1, k2, k3, k4, k5, k6 = jax.random.split(key, 7)
        gamma = jax.random.uniform(k1, (c,), jnp.float32, 0.5, 1.5)
        beta = 0.1 * jax.random.normal(k2, (c,), jnp.float32)
        rmean = 0.1 * jax.random.normal(k3, (c,), jnp.float32)
        rvar = jax.random.uniform(k4, (c,), jnp.float32, 0.5, 1.5)
        scale = gamma / jnp.sqrt(rvar + eps)
        shift = beta - rmean * scale
        w = 0.1 * jax.random.normal(k5, (3, 3, c, growth_rate), jnp.float32)  # HWIO
        b = 0.1 * jax.random.normal(k6, (growth_rate,), jnp.float32)
        params.append(dict(scale=scale, shift=shift, w=w, b=b))
        c += growth_rate
    return params


if __name__ == "__main__":
    N, C_IN, H, W = 2, 4, 16, 16
    NUM_CONVS, GROWTH = 3, 4

    key = jax.random.PRNGKey(0)
    key, kx = jax.random.split(key)
    x = jax.random.normal(kx, (N, C_IN, H, W), jnp.float32)      # NCHW like PyTorch
    params = init_params(key, NUM_CONVS, C_IN, GROWTH)

    C_TOTAL = C_IN + NUM_CONVS * GROWTH
    for dilation in (1, 2):
        ref = dense_block_ref(x, params, dilation=dilation)

        # f32 MXU operands: tight check against the pure-JAX reference.
        out_f32 = jax.block_until_ready(
            dense_block(x, params, dilation=dilation, mxu_dtype=jnp.float32))
        assert out_f32.shape == (N, C_TOTAL, H, W), out_f32.shape
        np.testing.assert_allclose(np.asarray(out_f32), np.asarray(ref),
                                   atol=1e-3, rtol=1e-3)

        # Default bf16 MXU operands (f32 accumulation): looser tolerance, as
        # flagged in the review, due to bf16 rounding of activations/weights.
        out_bf16 = jax.block_until_ready(
            dense_block(x, params, dilation=dilation))
        assert out_bf16.shape == (N, C_TOTAL, H, W), out_bf16.shape
        np.testing.assert_allclose(np.asarray(out_bf16), np.asarray(ref),
                                   atol=3e-2, rtol=3e-2)

    print("KERNEL_OK")
</pallas_src>

<mosaic_0001>
module attributes {stable_mosaic.version = 11 : i64} {
  func.func @_dense_block_kernel(%arg0: i32, %arg1: memref<1x4x256xf32, #tpu.memory_space<vmem>>, %arg2: memref<4x1xf32, #tpu.memory_space<vmem>>, %arg3: memref<4x1xf32, #tpu.memory_space<vmem>>, %arg4: memref<4x1xf32, #tpu.memory_space<vmem>>, %arg5: memref<4x72xf32, #tpu.memory_space<vmem>>, %arg6: memref<8x1xf32, #tpu.memory_space<vmem>>, %arg7: memref<8x1xf32, #tpu.memory_space<vmem>>, %arg8: memref<4x1xf32, #tpu.memory_space<vmem>>, %arg9: memref<4x72xf32, #tpu.memory_space<vmem>>, %arg10: memref<12x1xf32, #tpu.memory_space<vmem>>, %arg11: memref<12x1xf32, #tpu.memory_space<vmem>>, %arg12: memref<4x1xf32, #tpu.memory_space<vmem>>, %arg13: memref<4x144xf32, #tpu.memory_space<vmem>>, %arg14: memref<1x16x256xf32, #tpu.memory_space<vmem>>, %arg15: memref<16x512xf32, #tpu.memory_space<vmem>>, %arg16: memref<144x256xf32, #tpu.memory_space<vmem>>) attributes {dimension_semantics = [#tpu.dimension_semantics<parallel>], iteration_bounds = array<i64: 2>, scalar_prefetch = 0 : i64, scratch_operands = 2 : i64, tpu.core_type = #tpu.core_type<tc>, window_params = [{transform_indices = @transform_0, window_bounds = array<i64: 1, 4, 256>}, {pipeline_mode = #tpu.pipeline_mode<synchronous>, transform_indices = @transform_1, window_bounds = array<i64: 4, 1>}, {pipeline_mode = #tpu.pipeline_mode<synchronous>, transform_indices = @transform_2, window_bounds = array<i64: 4, 1>}, {pipeline_mode = #tpu.pipeline_mode<synchronous>, transform_indices = @transform_3, window_bounds = array<i64: 4, 1>}, {pipeline_mode = #tpu.pipeline_mode<synchronous>, transform_indices = @transform_4, window_bounds = array<i64: 4, 72>}, {pipeline_mode = #tpu.pipeline_mode<synchronous>, transform_indices = @transform_5, window_bounds = array<i64: 8, 1>}, {pipeline_mode = #tpu.pipeline_mode<synchronous>, transform_indices = @transform_6, window_bounds = array<i64: 8, 1>}, {pipeline_mode = #tpu.pipeline_mode<synchronous>, transform_indices = @transform_7, window_bounds = array<i64: 4, 1>}, {pipeline_mode = #tpu.pipeline_mode<synchronous>, transform_indices = @transform_8, window_bounds = array<i64: 4, 72>}, {pipeline_mode = #tpu.pipeline_mode<synchronous>, transform_indices = @transform_9, window_bounds = array<i64: 12, 1>}, {pipeline_mode = #tpu.pipeline_mode<synchronous>, transform_indices = @transform_10, window_bounds = array<i64: 12, 1>}, {pipeline_mode = #tpu.pipeline_mode<synchronous>, transform_indices = @transform_11, window_bounds = array<i64: 4, 1>}, {pipeline_mode = #tpu.pipeline_mode<synchronous>, transform_indices = @transform_12, window_bounds = array<i64: 4, 144>}, {transform_indices = @transform_13, window_bounds = array<i64: 1, 16, 256>}]} {
    %c0 = arith.constant 0 : index
    %c0_0 = arith.constant 0 : index
    %c0_1 = arith.constant 0 : index
    %0 = vector.load %arg1[%c0, %c0_0, %c0_1] : memref<1x4x256xf32, #tpu.memory_space<vmem>>, vector<1x4x256xf32>
    %1 = vector.shape_cast %0 : vector<1x4x256xf32> to vector<4x256xf32>
    %c0_2 = arith.constant 0 : index
    %c0_3 = arith.constant 0 : index
    %c0_4 = arith.constant 0 : index
    %2 = vector.load %arg14[%c0_2, %c0_3, %c0_4] : memref<1x16x256xf32, #tpu.memory_space<vmem>>, vector<1x4x256xf32>
    %3 = vector.shape_cast %2 : vector<1x4x256xf32> to vector<4x256xf32>
    %4 = vector.shape_cast %1 : vector<4x256xf32> to vector<1x4x256xf32>
    tpu.vector_store %arg14[%c0_2, %c0_3, %c0_4], %4 {strides = array<i32>} : memref<1x16x256xf32, #tpu.memory_space<vmem>>, vector<1x4x256xf32>,
    %cst = arith.constant 0.000000e+00 : f32
    %5 = vector.broadcast %cst : f32 to vector<16x128xf32>
    %c0_5 = arith.constant 0 : index
    %c0_6 = arith.constant 0 : index
    %6 = vector.load %arg15[%c0_5, %c0_6] : memref<16x512xf32, #tpu.memory_space<vmem>>, vector<16x128xf32>
    tpu.vector_store %arg15[%c0_5, %c0_6], %5 {strides = array<i32>} : memref<16x512xf32, #tpu.memory_space<vmem>>, vector<16x128xf32>,
    %cst_7 = arith.constant 0.000000e+00 : f32
    %7 = vector.broadcast %cst_7 : f32 to vector<16x128xf32>
    %c0_8 = arith.constant 0 : index
    %c384 = arith.constant 384 : index
    %8 = vector.load %arg15[%c0_8, %c384] : memref<16x512xf32, #tpu.memory_space<vmem>>, vector<16x128xf32>
    tpu.vector_store %arg15[%c0_8, %c384], %7 {strides = array<i32>} : memref<16x512xf32, #tpu.memory_space<vmem>>, vector<16x128xf32>,
    %cst_9 = arith.constant 0.000000e+00 : f32
    %9 = vector.broadcast %cst_9 : f32 to vector<12x256xf32>
    %c4 = arith.constant 4 : index
    %c128 = arith.constant 128 : index
    %10 = vector.load %arg15[%c4, %c128] : memref<16x512xf32, #tpu.memory_space<vmem>>, vector<12x256xf32>
    tpu.vector_store %arg15[%c4, %c128], %9 {strides = array<i32>} : memref<16x512xf32, #tpu.memory_space<vmem>>, vector<12x256xf32>,
    %11 = tpu.iota {dimensions = array<i32: 1>} : vector<16x256xi32>
    %c16_i32 = arith.constant 16 : i32
    %c0_i32 = arith.constant 0 : i32
    %12 = arith.cmpi eq, %c16_i32, %c0_i32 : i32
    %c1_i32 = arith.constant 1 : i32
    %13 = arith.select %12, %c1_i32, %c16_i32 : i32
    %14 = vector.broadcast %13 : i32 to vector<16x256xi32>
    %15 = arith.remsi %11, %14 : vector<16x256xi32>
    %c0_i32_10 = arith.constant 0 : i32
    %16 = vector.broadcast %c0_i32_10 : i32 to vector<16x256xi32>
    %17 = arith.cmpi ne, %15, %16 : vector<16x256xi32>
    %c0_i32_11 = arith.constant 0 : i32
    %18 = vector.broadcast %c0_i32_11 : i32 to vector<16x256xi32>
    %19 = arith.cmpi slt, %15, %18 : vector<16x256xi32>
    %c0_i32_12 = arith.constant 0 : i32
    %20 = arith.cmpi slt, %13, %c0_i32_12 : i32
    %21 = vector.broadcast %20 : i1 to vector<16x256xi1>
    %22 = vector.broadcast %21 : vector<16x256xi1> to vector<16x256xi1>
    %23 = arith.xori %19, %22 : vector<16x256xi1>
    %24 = arith.andi %23, %17 : vector<16x256xi1>
    %25 = vector.broadcast %13 : i32 to vector<16x256xi32>
    %26 = arith.addi %15, %25 : vector<16x256xi32>
    %27 = arith.select %24, %26, %15 : vector<16x256xi1>, vector<16x256xi32>
    %c1_i32_13 = arith.constant 1 : i32
    %28 = vector.broadcast %c1_i32_13 : i32 to vector<16x256xi32>
    %29 = arith.cmpi sge, %27, %28 : vector<16x256xi32>
    %30 = arith.extui %29 : vector<16x256xi1> to vector<16x256xi32>
    %31 = arith.sitofp %30 : vector<16x256xi32> to vector<16x256xf32>
    %c15_i32 = arith.constant 15 : i32
    %32 = vector.broadcast %c15_i32 : i32 to vector<16x256xi32>
    %33 = arith.cmpi slt, %27, %32 : vector<16x256xi32>
    %34 = arith.extui %33 : vector<16x256xi1> to vector<16x256xi32>
    %35 = arith.sitofp %34 : vector<16x256xi32> to vector<16x256xf32>
    %c0_14 = arith.constant 0 : index
    %c0_15 = arith.constant 0 : index
    %c0_16 = arith.constant 0 : index
    %36 = vector.load %arg14[%c0_14, %c0_15, %c0_16] : memref<1x16x256xf32, #tpu.memory_space<vmem>>, vector<1x4x256xf32>
    %37 = vector.shape_cast %36 : vector<1x4x256xf32> to vector<4x256xf32>
    %c0_17 = arith.constant 0 : index
    %c0_18 = arith.constant 0 : index
    %38 = vector.load %arg2[%c0_17, %c0_18] : memref<4x1xf32, #tpu.memory_space<vmem>>, vector<4x1xf32>
    %39 = vector.broadcast %38 : vector<4x1xf32> to vector<4x256xf32>
    %40 = arith.mulf %37, %39 : vector<4x256xf32>
    %c0_19 = arith.constant 0 : index
    %c0_20 = arith.constant 0 : index
    %41 = vector.load %arg3[%c0_19, %c0_20] : memref<4x1xf32, #tpu.memory_space<vmem>>, vector<4x1xf32>
    %42 = vector.broadcast %41 : vector<4x1xf32> to vector<4x256xf32>
    %43 = arith.addf %40, %42 : vector<4x256xf32>
    %cst_21 = arith.constant 0.000000e+00 : f32
    %44 = vector.broadcast %cst_21 : f32 to vector<4x256xf32>
    %45 = arith.maximumf %43, %44 : vector<4x256xf32>
    %c0_22 = arith.constant 0 : index
    %c128_23 = arith.constant 128 : index
    %46 = vector.load %arg15[%c0_22, %c128_23] : memref<16x512xf32, #tpu.memory_space<vmem>>, vector<4x256xf32>
    tpu.vector_store %arg15[%c0_22, %c128_23], %45 {strides = array<i32>} : memref<16x512xf32, #tpu.memory_space<vmem>>, vector<4x256xf32>,
    %c0_24 = arith.constant 0 : index
    %c111 = arith.constant 111 : index
    %47 = vector.load %arg15[%c0_24, %c111] : memref<16x512xf32, #tpu.memory_space<vmem>>, vector<8x256xf32>
    %48 = vector.extract_strided_slice %31 {offsets = [0, 0], sizes = [8, 256], strides = [1, 1]} : vector<16x256xf32> to vector<8x256xf32>
    %49 = arith.mulf %47, %48 : vector<8x256xf32>
    %c0_25 = arith.constant 0 : index
    %c0_26 = arith.constant 0 : index
    %50 = vector.load %arg16[%c0_25, %c0_26] : memref<144x256xf32, #tpu.memory_space<vmem>>, vector<8x256xf32>
    tpu.vector_store %arg16[%c0_25, %c0_26], %49 {strides = array<i32>} : memref<144x256xf32, #tpu.memory_space<vmem>>, vector<8x256xf32>,
    %c0_27 = arith.constant 0 : index
    %c112 = arith.constant 112 : index
    %51 = vector.load %arg15[%c0_27, %c112] : memref<16x512xf32, #tpu.memory_space<vmem>>, vector<8x256xf32>
    %c8 = arith.constant 8 : index
    %c0_28 = arith.constant 0 : index
    %52 = vector.load %arg16[%c8, %c0_28] : memref<144x256xf32, #tpu.memory_space<vmem>>, vector<8x256xf32>
    tpu.vector_store %arg16[%c8, %c0_28], %51 {strides = array<i32>} : memref<144x256xf32, #tpu.memory_space<vmem>>, vector<8x256xf32>,
    %c0_29 = arith.constant 0 : index
    %c113 = arith.constant 113 : index
    %53 = vector.load %arg15[%c0_29, %c113] : memref<16x512xf32, #tpu.memory_space<vmem>>, vector<8x256xf32>
    %54 = vector.extract_strided_slice %35 {offsets = [0, 0], sizes = [8, 256], strides = [1, 1]} : vector<16x256xf32> to vector<8x256xf32>
    %55 = arith.mulf %53, %54 : vector<8x256xf32>
    %c16 = arith.constant 16 : index
    %c0_30 = arith.constant 0 : index
    %56 = vector.load %arg16[%c16, %c0_30] : memref<144x256xf32, #tpu.memory_space<vmem>>, vector<8x256xf32>
    tpu.vector_store %arg16[%c16, %c0_30], %55 {strides = array<i32>} : memref<144x256xf32, #tpu.memory_space<vmem>>, vector<8x256xf32>,
    %c0_31 = arith.constant 0 : index
    %c127 = arith.constant 127 : index
    %57 = vector.load %arg15[%c0_31, %c127] : memref<16x512xf32, #tpu.memory_space<vmem>>, vector<8x256xf32>
    %58 = vector.extract_strided_slice %31 {offsets = [0, 0], sizes = [8, 256], strides = [1, 1]} : vector<16x256xf32> to vector<8x256xf32>
    %59 = arith.mulf %57, %58 : vector<8x256xf32>
    %c24 = arith.constant 24 : index
    %c0_32 = arith.constant 0 : index
    %60 = vector.load %arg16[%c24, %c0_32] : memref<144x256xf32, #tpu.memory_space<vmem>>, vector<8x256xf32>
    tpu.vector_store %arg16[%c24, %c0_32], %59 {strides = array<i32>} : memref<144x256xf32, #tpu.memory_space<vmem>>, vector<8x256xf32>,
    %c0_33 = arith.constant 0 : index
    %c128_34 = arith.constant 128 : index
    %61 = vector.load %arg15[%c0_33, %c128_34] : memref<16x512xf32, #tpu.memory_space<vmem>>, vector<8x256xf32>
    %c32 = arith.constant 32 : index
    %c0_35 = arith.constant 0 : index
    %62 = vector.load %arg16[%c32, %c0_35] : memref<144x256xf32, #tpu.memory_space<vmem>>, vector<8x256xf32>
    tpu.vector_store %arg16[%c32, %c0_35], %61 {strides = array<i32>} : memref<144x256xf32, #tpu.memory_space<vmem>>, vector<8x256xf32>,
    %c0_36 = arith.constant 0 : index
    %c129 = arith.constant 129 : index
    %63 = vector.load %arg15[%c0_36, %c129] : memref<16x512xf32, #tpu.memory_space<vmem>>, vector<8x256xf32>
    %64 = vector.extract_strided_slice %35 {offsets = [0, 0], sizes = [8, 256], strides = [1, 1]} : vector<16x256xf32> to vector<8x256xf32>
    %65 = arith.mulf %63, %64 : vector<8x256xf32>
    %c40 = arith.constant 40 : index
    %c0_37 = arith.constant 0 : index
    %66 = vector.load %arg16[%c40, %c0_37] : memref<144x256xf32, #tpu.memory_space<vmem>>, vector<8x256xf32>
    tpu.vector_store %arg16[%c40, %c0_37], %65 {strides = array<i32>} : memref<144x256xf32, #tpu.memory_space<vmem>>, vector<8x256xf32>,
    %c0_38 = arith.constant 0 : index
    %c143 = arith.constant 143 : index
    %67 = vector.load %arg15[%c0_38, %c143] : memref<16x512xf32, #tpu.memory_space<vmem>>, vector<8x256xf32>
    %68 = vector.extract_strided_slice %31 {offsets = [0, 0], sizes = [8, 256], strides = [1, 1]} : vector<16x256xf32> to vector<8x256xf32>
    %69 = arith.mulf %67, %68 : vector<8x256xf32>
    %c48 = arith.constant 48 : index
    %c0_39 = arith.constant 0 : index
    %70 = vector.load %arg16[%c48, %c0_39] : memref<144x256xf32, #tpu.memory_space<vmem>>, vector<8x256xf32>
    tpu.vector_store %arg16[%c48, %c0_39], %69 {strides = array<i32>} : memref<144x256xf32, #tpu.memory_space<vmem>>, vector<8x256xf32>,
    %c0_40 = arith.constant 0 : index
    %c144 = arith.constant 144 : index
    %71 = vector.load %arg15[%c0_40, %c144] : memref<16x512xf32, #tpu.memory_space<vmem>>, vector<8x256xf32>
    %c56 = arith.constant 56 : index
    %c0_41 = arith.constant 0 : index
    %72 = vector.load %arg16[%c56, %c0_41] : memref<144x256xf32, #tpu.memory_space<vmem>>, vector<8x256xf32>
    tpu.vector_store %arg16[%c56, %c0_41], %71 {strides = array<i32>} : memref<144x256xf32, #tpu.memory_space<vmem>>, vector<8x256xf32>,
    %c0_42 = arith.constant 0 : index
    %c145 = arith.constant 145 : index
    %73 = vector.load %arg15[%c0_42, %c145] : memref<16x512xf32, #tpu.memory_space<vmem>>, vector<8x256xf32>
    %74 = vector.extract_strided_slice %35 {offsets = [0, 0], sizes = [8, 256], strides = [1, 1]} : vector<16x256xf32> to vector<8x256xf32>
    %75 = arith.mulf %73, %74 : vector<8x256xf32>
    %c64 = arith.constant 64 : index
    %c0_43 = arith.constant 0 : index
    %76 = vector.load %arg16[%c64, %c0_43] : memref<144x256xf32, #tpu.memory_space<vmem>>, vector<8x256xf32>
    tpu.vector_store %arg16[%c64, %c0_43], %75 {strides = array<i32>} : memref<144x256xf32, #tpu.memory_space<vmem>>, vector<8x256xf32>,
    %c0_44 = arith.constant 0 : index
    %c0_45 = arith.constant 0 : index
    %77 = vector.load %arg5[%c0_44, %c0_45] : memref<4x72xf32, #tpu.memory_space<vmem>>, vector<4x72xf32>
    %c0_46 = arith.constant 0 : index
    %c0_47 = arith.constant 0 : index
    %78 = vector.load %arg16[%c0_46, %c0_47] : memref<144x256xf32, #tpu.memory_space<vmem>>, vector<72x256xf32>
    %cst_48 = arith.constant dense<0.000000e+00> : vector<4x256xf32>
    %79 = tpu.matmul %77, %78, %cst_48 {dimension_numbers = #tpu.dot_dimension_numbers<[1], [0], [0], [1], [0, 0, 1, 1], [], []>} : vector<4x72xf32>, vector<72x256xf32>, vector<4x256xf32> -> vector<4x256xf32>
    %c0_49 = arith.constant 0 : index
    %c0_50 = arith.constant 0 : index
    %80 = vector.load %arg4[%c0_49, %c0_50] : memref<4x1xf32, #tpu.memory_space<vmem>>, vector<4x1xf32>
    %81 = vector.broadcast %80 : vector<4x1xf32> to vector<4x256xf32>
    %82 = arith.addf %79, %81 : vector<4x256xf32>
    %c0_51 = arith.constant 0 : index
    %c4_52 = arith.constant 4 : index
    %c0_53 = arith.constant 0 : index
    %83 = vector.load %arg14[%c0_51, %c4_52, %c0_53] : memref<1x16x256xf32, #tpu.memory_space<vmem>>, vector<1x4x256xf32>
    %84 = vector.shape_cast %83 : vector<1x4x256xf32> to vector<4x256xf32>
    %85 = vector.shape_cast %82 : vector<4x256xf32> to vector<1x4x256xf32>
    tpu.vector_store %arg14[%c0_51, %c4_52, %c0_53], %85 {strides = array<i32>} : memref<1x16x256xf32, #tpu.memory_space<vmem>>, vector<1x4x256xf32>,
    %c0_54 = arith.constant 0 : index
    %c0_55 = arith.constant 0 : index
    %c0_56 = arith.constant 0 : index
    %86 = vector.load %arg14[%c0_54, %c0_55, %c0_56] : memref<1x16x256xf32, #tpu.memory_space<vmem>>, vector<1x8x256xf32>
    %87 = vector.shape_cast %86 : vector<1x8x256xf32> to vector<8x256xf32>
    %c0_57 = arith.constant 0 : index
    %c0_58 = arith.constant 0 : index
    %88 = vector.load %arg6[%c0_57, %c0_58] : memref<8x1xf32, #tpu.memory_space<vmem>>, vector<8x1xf32>
    %89 = vector.broadcast %88 : vector<8x1xf32> to vector<8x256xf32>
    %90 = arith.mulf %87, %89 : vector<8x256xf32>
    %c0_59 = arith.constant 0 : index
    %c0_60 = arith.constant 0 : index
    %91 = vector.load %arg7[%c0_59, %c0_60] : memref<8x1xf32, #tpu.memory_space<vmem>>, vector<8x1xf32>
    %92 = vector.broadcast %91 : vector<8x1xf32> to vector<8x256xf32>
    %93 = arith.addf %90, %92 : vector<8x256xf32>
    %cst_61 = arith.constant 0.000000e+00 : f32
    %94 = vector.broadcast %cst_61 : f32 to vector<8x256xf32>
    %95 = arith.maximumf %93, %94 : vector<8x256xf32>
    %c0_62 = arith.constant 0 : index
    %c128_63 = arith.constant 128 : index
    %96 = vector.load %arg15[%c0_62, %c128_63] : memref<16x512xf32, #tpu.memory_space<vmem>>, vector<8x256xf32>
    tpu.vector_store %arg15[%c0_62, %c128_63], %95 {strides = array<i32>} : memref<16x512xf32, #tpu.memory_space<vmem>>, vector<8x256xf32>,
    %c0_64 = arith.constant 0 : index
    %c111_65 = arith.constant 111 : index
    %97 = vector.load %arg15[%c0_64, %c111_65] : memref<16x512xf32, #tpu.memory_space<vmem>>, vector<8x256xf32>
    %98 = vector.extract_strided_slice %31 {offsets = [0, 0], sizes = [8, 256], strides = [1, 1]} : vector<16x256xf32> to vector<8x256xf32>
    %99 = arith.mulf %97, %98 : vector<8x256xf32>
    %c0_66 = arith.constant 0 : index
    %c0_67 = arith.constant 0 : index
    %100 = vector.load %arg16[%c0_66, %c0_67] : memref<144x256xf32, #tpu.memory_space<vmem>>, vector<8x256xf32>
    tpu.vector_store %arg16[%c0_66, %c0_67], %99 {strides = array<i32>} : memref<144x256xf32, #tpu.memory_space<vmem>>, vector<8x256xf32>,
    %c0_68 = arith.constant 0 : index
    %c112_69 = arith.constant 112 : index
    %101 = vector.load %arg15[%c0_68, %c112_69] : memref<16x512xf32, #tpu.memory_space<vmem>>, vector<8x256xf32>
    %c8_70 = arith.constant 8 : index
    %c0_71 = arith.constant 0 : index
    %102 = vector.load %arg16[%c8_70, %c0_71] : memref<144x256xf32, #tpu.memory_space<vmem>>, vector<8x256xf32>
    tpu.vector_store %arg16[%c8_70, %c0_71], %101 {strides = array<i32>} : memref<144x256xf32, #tpu.memory_space<vmem>>, vector<8x256xf32>,
    %c0_72 = arith.constant 0 : index
    %c113_73 = arith.constant 113 : index
    %103 = vector.load %arg15[%c0_72, %c113_73] : memref<16x512xf32, #tpu.memory_space<vmem>>, vector<8x256xf32>
    %104 = vector.extract_strided_slice %35 {offsets = [0, 0], sizes = [8, 256], strides = [1, 1]} : vector<16x256xf32> to vector<8x256xf32>
    %105 = arith.mulf %103, %104 : vector<8x256xf32>
    %c16_74 = arith.constant 16 : index
    %c0_75 = arith.constant 0 : index
    %106 = vector.load %arg16[%c16_74, %c0_75] : memref<144x256xf32, #tpu.memory_space<vmem>>, vector<8x256xf32>
    tpu.vector_store %arg16[%c16_74, %c0_75], %105 {strides = array<i32>} : memref<144x256xf32, #tpu.memory_space<vmem>>, vector<8x256xf32>,
    %c0_76 = arith.constant 0 : index
    %c127_77 = arith.constant 127 : index
    %107 = vector.load %arg15[%c0_76, %c127_77] : memref<16x512xf32, #tpu.memory_space<vmem>>, vector<8x256xf32>
    %108 = vector.extract_strided_slice %31 {offsets = [0, 0], sizes = [8, 256], strides = [1, 1]} : vector<16x256xf32> to vector<8x256xf32>
    %109 = arith.mulf %107, %108 : vector<8x256xf32>
    %c24_78 = arith.constant 24 : index
    %c0_79 = arith.constant 0 : index
    %110 = vector.load %arg16[%c24_78, %c0_79] : memref<144x256xf32, #tpu.memory_space<vmem>>, vector<8x256xf32>
    tpu.vector_store %arg16[%c24_78, %c0_79], %109 {strides = array<i32>} : memref<144x256xf32, #tpu.memory_space<vmem>>, vector<8x256xf32>,
    %c0_80 = arith.constant 0 : index
    %c128_81 = arith.constant 128 : index
    %111 = vector.load %arg15[%c0_80, %c128_81] : memref<16x512xf32, #tpu.memory_space<vmem>>, vector<8x256xf32>
    %c32_82 = arith.constant 32 : index
    %c0_83 = arith.constant 0 : index
    %112 = vector.load %arg16[%c32_82, %c0_83] : memref<144x256xf32, #tpu.memory_space<vmem>>, vector<8x256xf32>
    tpu.vector_store %arg16[%c32_82, %c0_83], %111 {strides = array<i32>} : memref<144x256xf32, #tpu.memory_space<vmem>>, vector<8x256xf32>,
    %c0_84 = arith.constant 0 : index
    %c129_85 = arith.constant 129 : index
    %113 = vector.load %arg15[%c0_84, %c129_85] : memref<16x512xf32, #tpu.memory_space<vmem>>, vector<8x256xf32>
    %114 = vector.extract_strided_slice %35 {offsets = [0, 0], sizes = [8, 256], strides = [1, 1]} : vector<16x256xf32> to vector<8x256xf32>
    %115 = arith.mulf %113, %114 : vector<8x256xf32>
    %c40_86 = arith.constant 40 : index
    %c0_87 = arith.constant 0 : index
    %116 = vector.load %arg16[%c40_86, %c0_87] : memref<144x256xf32, #tpu.memory_space<vmem>>, vector<8x256xf32>
    tpu.vector_store %arg16[%c40_86, %c0_87], %115 {strides = array<i32>} : memref<144x256xf32, #tpu.memory_space<vmem>>, vector<8x256xf32>,
    %c0_88 = arith.constant 0 : index
    %c143_89 = arith.constant 143 : index
    %117 = vector.load %arg15[%c0_88, %c143_89] : memref<16x512xf32, #tpu.memory_space<vmem>>, vector<8x256xf32>
    %118 = vector.extract_strided_slice %31 {offsets = [0, 0], sizes = [8, 256], strides = [1, 1]} : vector<16x256xf32> to vector<8x256xf32>
    %119 = arith.mulf %117, %118 : vector<8x256xf32>
    %c48_90 = arith.constant 48 : index
    %c0_91 = arith.constant 0 : index
    %120 = vector.load %arg16[%c48_90, %c0_91] : memref<144x256xf32, #tpu.memory_space<vmem>>, vector<8x256xf32>
    tpu.vector_store %arg16[%c48_90, %c0_91], %119 {strides = array<i32>} : memref<144x256xf32, #tpu.memory_space<vmem>>, vector<8x256xf32>,
    %c0_92 = arith.constant 0 : index
    %c144_93 = arith.constant 144 : index
    %121 = vector.load %arg15[%c0_92, %c144_93] : memref<16x512xf32, #tpu.memory_space<vmem>>, vector<8x256xf32>
    %c56_94 = arith.constant 56 : index
    %c0_95 = arith.constant 0 : index
    %122 = vector.load %arg16[%c56_94, %c0_95] : memref<144x256xf32, #tpu.memory_space<vmem>>, vector<8x256xf32>
    tpu.vector_store %arg16[%c56_94, %c0_95], %121 {strides = array<i32>} : memref<144x256xf32, #tpu.memory_space<vmem>>, vector<8x256xf32>,
    %c0_96 = arith.constant 0 : index
    %c145_97 = arith.constant 145 : index
    %123 = vector.load %arg15[%c0_96, %c145_97] : memref<16x512xf32, #tpu.memory_space<vmem>>, vector<8x256xf32>
    %124 = vector.extract_strided_slice %35 {offsets = [0, 0], sizes = [8, 256], strides = [1, 1]} : vector<16x256xf32> to vector<8x256xf32>
    %125 = arith.mulf %123, %124 : vector<8x256xf32>
    %c64_98 = arith.constant 64 : index
    %c0_99 = arith.constant 0 : index
    %126 = vector.load %arg16[%c64_98, %c0_99] : memref<144x256xf32, #tpu.memory_space<vmem>>, vector<8x256xf32>
    tpu.vector_store %arg16[%c64_98, %c0_99], %125 {strides = array<i32>} : memref<144x256xf32, #tpu.memory_space<vmem>>, vector<8x256xf32>,
    %c0_100 = arith.constant 0 : index
    %c0_101 = arith.constant 0 : index
    %127 = vector.load %arg9[%c0_100, %c0_101] : memref<4x72xf32, #tpu.memory_space<vmem>>, vector<4x72xf32>
    %c0_102 = arith.constant 0 : index
    %c0_103 = arith.constant 0 : index
    %128 = vector.load %arg16[%c0_102, %c0_103] : memref<144x256xf32, #tpu.memory_space<vmem>>, vector<72x256xf32>
    %cst_104 = arith.constant dense<0.000000e+00> : vector<4x256xf32>
    %129 = tpu.matmul %127, %128, %cst_104 {dimension_numbers = #tpu.dot_dimension_numbers<[1], [0], [0], [1], [0, 0, 1, 1], [], []>} : vector<4x72xf32>, vector<72x256xf32>, vector<4x256xf32> -> vector<4x256xf32>
    %c0_105 = arith.constant 0 : index
    %c0_106 = arith.constant 0 : index
    %130 = vector.load %arg8[%c0_105, %c0_106] : memref<4x1xf32, #tpu.memory_space<vmem>>, vector<4x1xf32>
    %131 = vector.broadcast %130 : vector<4x1xf32> to vector<4x256xf32>
    %132 = arith.addf %129, %131 : vector<4x256xf32>
    %c0_107 = arith.constant 0 : index
    %c8_108 = arith.constant 8 : index
    %c0_109 = arith.constant 0 : index
    %133 = vector.load %arg14[%c0_107, %c8_108, %c0_109] : memref<1x16x256xf32, #tpu.memory_space<vmem>>, vector<1x4x256xf32>
    %134 = vector.shape_cast %133 : vector<1x4x256xf32> to vector<4x256xf32>
    %135 = vector.shape_cast %132 : vector<4x256xf32> to vector<1x4x256xf32>
    tpu.vector_store %arg14[%c0_107, %c8_108, %c0_109], %135 {strides = array<i32>} : memref<1x16x256xf32, #tpu.memory_space<vmem>>, vector<1x4x256xf32>,
    %c0_110 = arith.constant 0 : index
    %c0_111 = arith.constant 0 : index
    %c0_112 = arith.constant 0 : index
    %136 = vector.load %arg14[%c0_110, %c0_111, %c0_112] : memref<1x16x256xf32, #tpu.memory_space<vmem>>, vector<1x12x256xf32>
    %137 = vector.shape_cast %136 : vector<1x12x256xf32> to vector<12x256xf32>
    %c0_113 = arith.constant 0 : index
    %c0_114 = arith.constant 0 : index
    %138 = vector.load %arg10[%c0_113, %c0_114] : memref<12x1xf32, #tpu.memory_space<vmem>>, vector<12x1xf32>
    %139 = vector.broadcast %138 : vector<12x1xf32> to vector<12x256xf32>
    %140 = arith.mulf %137, %139 : vector<12x256xf32>
    %c0_115 = arith.constant 0 : index
    %c0_116 = arith.constant 0 : index
    %141 = vector.load %arg11[%c0_115, %c0_116] : memref<12x1xf32, #tpu.memory_space<vmem>>, vector<12x1xf32>
    %142 = vector.broadcast %141 : vector<12x1xf32> to vector<12x256xf32>
    %143 = arith.addf %140, %142 : vector<12x256xf32>
    %cst_117 = arith.constant 0.000000e+00 : f32
    %144 = vector.broadcast %cst_117 : f32 to vector<12x256xf32>
    %145 = arith.maximumf %143, %144 : vector<12x256xf32>
    %c0_118 = arith.constant 0 : index
    %c128_119 = arith.constant 128 : index
    %146 = vector.load %arg15[%c0_118, %c128_119] : memref<16x512xf32, #tpu.memory_space<vmem>>, vector<12x256xf32>
    tpu.vector_store %arg15[%c0_118, %c128_119], %145 {strides = array<i32>} : memref<16x512xf32, #tpu.memory_space<vmem>>, vector<12x256xf32>,
    %c0_120 = arith.constant 0 : index
    %c111_121 = arith.constant 111 : index
    %147 = vector.load %arg15[%c0_120, %c111_121] : memref<16x512xf32, #tpu.memory_space<vmem>>, vector<16x256xf32>
    %148 = arith.mulf %147, %31 : vector<16x256xf32>
    %c0_122 = arith.constant 0 : index
    %c0_123 = arith.constant 0 : index
    %149 = vector.load %arg16[%c0_122, %c0_123] : memref<144x256xf32, #tpu.memory_space<vmem>>, vector<16x256xf32>
    tpu.vector_store %arg16[%c0_122, %c0_123], %148 {strides = array<i32>} : memref<144x256xf32, #tpu.memory_space<vmem>>, vector<16x256xf32>,
    %c0_124 = arith.constant 0 : index
    %c112_125 = arith.constant 112 : index
    %150 = vector.load %arg15[%c0_124, %c112_125] : memref<16x512xf32, #tpu.memory_space<vmem>>, vector<16x256xf32>
    %c16_126 = arith.constant 16 : index
    %c0_127 = arith.constant 0 : index
    %151 = vector.load %arg16[%c16_126, %c0_127] : memref<144x256xf32, #tpu.memory_space<vmem>>, vector<16x256xf32>
    tpu.vector_store %arg16[%c16_126, %c0_127], %150 {strides = array<i32>} : memref<144x256xf32, #tpu.memory_space<vmem>>, vector<16x256xf32>,
    %c0_128 = arith.constant 0 : index
    %c113_129 = arith.constant 113 : index
    %152 = vector.load %arg15[%c0_128, %c113_129] : memref<16x512xf32, #tpu.memory_space<vmem>>, vector<16x256xf32>
    %153 = arith.mulf %152, %35 : vector<16x256xf32>
    %c32_130 = arith.constant 32 : index
    %c0_131 = arith.constant 0 : index
    %154 = vector.load %arg16[%c32_130, %c0_131] : memref<144x256xf32, #tpu.memory_space<vmem>>, vector<16x256xf32>
    tpu.vector_store %arg16[%c32_130, %c0_131], %153 {strides = array<i32>} : memref<144x256xf32, #tpu.memory_space<vmem>>, vector<16x256xf32>,
    %c0_132 = arith.constant 0 : index
    %c127_133 = arith.constant 127 : index
    %155 = vector.load %arg15[%c0_132, %c127_133] : memref<16x512xf32, #tpu.memory_space<vmem>>, vector<16x256xf32>
    %156 = arith.mulf %155, %31 : vector<16x256xf32>
    %c48_134 = arith.constant 48 : index
    %c0_135 = arith.constant 0 : index
    %157 = vector.load %arg16[%c48_134, %c0_135] : memref<144x256xf32, #tpu.memory_space<vmem>>, vector<16x256xf32>
    tpu.vector_store %arg16[%c48_134, %c0_135], %156 {strides = array<i32>} : memref<144x256xf32, #tpu.memory_space<vmem>>, vector<16x256xf32>,
    %c0_136 = arith.constant 0 : index
    %c128_137 = arith.constant 128 : index
    %158 = vector.load %arg15[%c0_136, %c128_137] : memref<16x512xf32, #tpu.memory_space<vmem>>, vector<16x256xf32>
    %c64_138 = arith.constant 64 : index
    %c0_139 = arith.constant 0 : index
    %159 = vector.load %arg16[%c64_138, %c0_139] : memref<144x256xf32, #tpu.memory_space<vmem>>, vector<16x256xf32>
    tpu.vector_store %arg16[%c64_138, %c0_139], %158 {strides = array<i32>} : memref<144x256xf32, #tpu.memory_space<vmem>>, vector<16x256xf32>,
    %c0_140 = arith.constant 0 : index
    %c129_141 = arith.constant 129 : index
    %160 = vector.load %arg15[%c0_140, %c129_141] : memref<16x512xf32, #tpu.memory_space<vmem>>, vector<16x256xf32>
    %161 = arith.mulf %160, %35 : vector<16x256xf32>
    %c80 = arith.constant 80 : index
    %c0_142 = arith.constant 0 : index
    %162 = vector.load %arg16[%c80, %c0_142] : memref<144x256xf32, #tpu.memory_space<vmem>>, vector<16x256xf32>
    tpu.vector_store %arg16[%c80, %c0_142], %161 {strides = array<i32>} : memref<144x256xf32, #tpu.memory_space<vmem>>, vector<16x256xf32>,
    %c0_143 = arith.constant 0 : index
    %c143_144 = arith.constant 143 : index
    %163 = vector.load %arg15[%c0_143, %c143_144] : memref<16x512xf32, #tpu.memory_space<vmem>>, vector<16x256xf32>
    %164 = arith.mulf %163, %31 : vector<16x256xf32>
    %c96 = arith.constant 96 : index
    %c0_145 = arith.constant 0 : index
    %165 = vector.load %arg16[%c96, %c0_145] : memref<144x256xf32, #tpu.memory_space<vmem>>, vector<16x256xf32>
    tpu.vector_store %arg16[%c96, %c0_145], %164 {strides = array<i32>} : memref<144x256xf32, #tpu.memory_space<vmem>>, vector<16x256xf32>,
    %c0_146 = arith.constant 0 : index
    %c144_147 = arith.constant 144 : index
    %166 = vector.load %arg15[%c0_146, %c144_147] : memref<16x512xf32, #tpu.memory_space<vmem>>, vector<16x256xf32>
    %c112_148 = arith.constant 112 : index
    %c0_149 = arith.constant 0 : index
    %167 = vector.load %arg16[%c112_148, %c0_149] : memref<144x256xf32, #tpu.memory_space<vmem>>, vector<16x256xf32>
    tpu.vector_store %arg16[%c112_148, %c0_149], %166 {strides = array<i32>} : memref<144x256xf32, #tpu.memory_space<vmem>>, vector<16x256xf32>,
    %c0_150 = arith.constant 0 : index
    %c145_151 = arith.constant 145 : index
    %168 = vector.load %arg15[%c0_150, %c145_151] : memref<16x512xf32, #tpu.memory_space<vmem>>, vector<16x256xf32>
    %169 = arith.mulf %168, %35 : vector<16x256xf32>
    %c128_152 = arith.constant 128 : index
    %c0_153 = arith.constant 0 : index
    %170 = vector.load %arg16[%c128_152, %c0_153] : memref<144x256xf32, #tpu.memory_space<vmem>>, vector<16x256xf32>
    tpu.vector_store %arg16[%c128_152, %c0_153], %169 {strides = array<i32>} : memref<144x256xf32, #tpu.memory_space<vmem>>, vector<16x256xf32>,
    %c0_154 = arith.constant 0 : index
    %c0_155 = arith.constant 0 : index
    %171 = vector.load %arg13[%c0_154, %c0_155] : memref<4x144xf32, #tpu.memory_space<vmem>>, vector<4x144xf32>
    %c0_156 = arith.constant 0 : index
    %c0_157 = arith.constant 0 : index
    %172 = vector.load %arg16[%c0_156, %c0_157] : memref<144x256xf32, #tpu.memory_space<vmem>>, vector<144x256xf32>
    %cst_158 = arith.constant dense<0.000000e+00> : vector<4x256xf32>
    %173 = tpu.matmul %171, %172, %cst_158 {dimension_numbers = #tpu.dot_dimension_numbers<[1], [0], [0], [1], [0, 0, 1, 1], [], []>} : vector<4x144xf32>, vector<144x256xf32>, vector<4x256xf32> -> vector<4x256xf32>
    %c0_159 = arith.constant 0 : index
    %c0_160 = arith.constant 0 : index
    %174 = vector.load %arg12[%c0_159, %c0_160] : memref<4x1xf32, #tpu.memory_space<vmem>>, vector<4x1xf32>
    %175 = vector.broadcast %174 : vector<4x1xf32> to vector<4x256xf32>
    %176 = arith.addf %173, %175 : vector<4x256xf32>
    %c0_161 = arith.constant 0 : index
    %c12 = arith.constant 12 : index
    %c0_162 = arith.constant 0 : index
    %177 = vector.load %arg14[%c0_161, %c12, %c0_162] : memref<1x16x256xf32, #tpu.memory_space<vmem>>, vector<1x4x256xf32>
    %178 = vector.shape_cast %177 : vector<1x4x256xf32> to vector<4x256xf32>
    %179 = vector.shape_cast %176 : vector<4x256xf32> to vector<1x4x256xf32>
    tpu.vector_store %arg14[%c0_161, %c12, %c0_162], %179 {strides = array<i32>} : memref<1x16x256xf32, #tpu.memory_space<vmem>>, vector<1x4x256xf32>,
    return
  }
  func.func @transform_0(%arg0: i32) -> (i32, i32, i32) {
    %c0_i32 = arith.constant 0 : i32
    %c0_i32_0 = arith.constant 0 : i32
    %c0_i32_1 = arith.constant 0 : i32
    return %arg0, %c0_i32, %c0_i32_0 : i32, i32, i32
  }
  func.func @transform_1(%arg0: i32) -> (i32, i32) {
    %c0_i32 = arith.constant 0 : i32
    %c0_i32_0 = arith.constant 0 : i32
    %c0_i32_1 = arith.constant 0 : i32
    return %c0_i32, %c0_i32_0 : i32, i32
  }
  func.func @transform_2(%arg0: i32) -> (i32, i32) {
    %c0_i32 = arith.constant 0 : i32
    %c0_i32_0 = arith.constant 0 : i32
    %c0_i32_1 = arith.constant 0 : i32
    return %c0_i32, %c0_i32_0 : i32, i32
  }
  func.func @transform_3(%arg0: i32) -> (i32, i32) {
    %c0_i32 = arith.constant 0 : i32
    %c0_i32_0 = arith.constant 0 : i32
    %c0_i32_1 = arith.constant 0 : i32
    return %c0_i32, %c0_i32_0 : i32, i32
  }
  func.func @transform_4(%arg0: i32) -> (i32, i32) {
    %c0_i32 = arith.constant 0 : i32
    %c0_i32_0 = arith.constant 0 : i32
    %c0_i32_1 = arith.constant 0 : i32
    return %c0_i32, %c0_i32_0 : i32, i32
  }
  func.func @transform_5(%arg0: i32) -> (i32, i32) {
    %c0_i32 = arith.constant 0 : i32
    %c0_i32_0 = arith.constant 0 : i32
    %c0_i32_1 = arith.constant 0 : i32
    return %c0_i32, %c0_i32_0 : i32, i32
  }
  func.func @transform_6(%arg0: i32) -> (i32, i32) {
    %c0_i32 = arith.constant 0 : i32
    %c0_i32_0 = arith.constant 0 : i32
    %c0_i32_1 = arith.constant 0 : i32
    return %c0_i32, %c0_i32_0 : i32, i32
  }
  func.func @transform_7(%arg0: i32) -> (i32, i32) {
    %c0_i32 = arith.constant 0 : i32
    %c0_i32_0 = arith.constant 0 : i32
    %c0_i32_1 = arith.constant 0 : i32
    return %c0_i32, %c0_i32_0 : i32, i32
  }
  func.func @transform_8(%arg0: i32) -> (i32, i32) {
    %c0_i32 = arith.constant 0 : i32
    %c0_i32_0 = arith.constant 0 : i32
    %c0_i32_1 = arith.constant 0 : i32
    return %c0_i32, %c0_i32_0 : i32, i32
  }
  func.func @transform_9(%arg0: i32) -> (i32, i32) {
    %c0_i32 = arith.constant 0 : i32
    %c0_i32_0 = arith.constant 0 : i32
    %c0_i32_1 = arith.constant 0 : i32
    return %c0_i32, %c0_i32_0 : i32, i32
  }
  func.func @transform_10(%arg0: i32) -> (i32, i32) {
    %c0_i32 = arith.constant 0 : i32
    %c0_i32_0 = arith.constant 0 : i32
    %c0_i32_1 = arith.constant 0 : i32
    return %c0_i32, %c0_i32_0 : i32, i32
  }
  func.func @transform_11(%arg0: i32) -> (i32, i32) {
    %c0_i32 = arith.constant 0 : i32
    %c0_i32_0 = arith.constant 0 : i32
    %c0_i32_1 = arith.constant 0 : i32
    return %c0_i32, %c0_i32_0 : i32, i32
  }
  func.func @transform_12(%arg0: i32) -> (i32, i32) {
    %c0_i32 = arith.constant 0 : i32
    %c0_i32_0 = arith.constant 0 : i32
    %c0_i32_1 = arith.constant 0 : i32
    return %c0_i32, %c0_i32_0 : i32, i32
  }
  func.func @transform_13(%arg0: i32) -> (i32, i32, i32) {
    %c0_i32 = arith.constant 0 : i32
    %c0_i32_0 = arith.constant 0 : i32
    %c0_i32_1 = arith.constant 0 : i32
    return %arg0, %c0_i32, %c0_i32_0 : i32, i32, i32
  }
}

</mosaic_0001>

<bundles_post_ra>
// kernel: tpu_custom_call.1
= control target key start
LH: loop header
LB: loop body
LE: loop exit
PB: predicated region body
PF: predicated region fallthrough
CT: control target
= control target key end

     0   :  { %s2581_s0 = inlined_call_operand.vmem [shape: f32[2,4,256], index: 0, kind: input, shape index: {}]   ;;  %s2582_s1 = inlined_call_operand.vmem [shape: f32[4,1], index: 1, kind: input, shape index: {}]   ;;  %s2583_s2 = inlined_call_operand.vmem [shape: f32[4,1], index: 2, kind: input, shape index: {}]   ;;  %s2584_s3 = inlined_call_operand.vmem [shape: f32[4,1], index: 3, kind: input, shape index: {}]   ;;  %s2585_s4 = inlined_call_operand.vmem [shape: f32[4,72], index: 4, kind: input, shape index: {}]   ;;  %s2586_s5 = inlined_call_operand.vmem [shape: f32[8,1], index: 5, kind: input, shape index: {}]   ;;  %s2587_s6 = inlined_call_operand.vmem [shape: f32[8,1], index: 6, kind: input, shape index: {}]   ;;  %s2588_s7 = inlined_call_operand.vmem [shape: f32[4,1], index: 7, kind: input, shape index: {}]   ;;  %s2589_s8 = inlined_call_operand.vmem [shape: f32[4,72], index: 8, kind: input, shape index: {}]   ;;  %s2590_s9 = inlined_call_operand.vmem [shape: f32[12,1], index: 9, kind: input, shape index: {}]   ;;  %s2591_s10 = inlined_call_operand.vmem [shape: f32[12,1], index: 10, kind: input, shape index: {}]   ;;  %s2592_s11 = inlined_call_operand.vmem [shape: f32[4,1], index: 11, kind: input, shape index: {}]   ;;  %s2593_s12 = inlined_call_operand.vmem [shape: f32[4,144], index: 12, kind: input, shape index: {}]   ;;  %s2594_s13 = inlined_call_operand.hbm [shape: f32[2,16,256], index: 13, kind: output, shape index: {}]  }
   0x1   :  { %2612 = sst [smem:[#allocation8_spill]] %s2581_s0 }
   0x2   :  { %2613 = sst [smem:[#allocation9_spill]] %s2582_s1 }
   0x3   :  { %2614 = sst [smem:[#allocation10_spill]] %s2583_s2 }
   0x4   :  { %2615 = sst [smem:[#allocation11_spill]] %s2584_s3 }
   0x5   :  { %2616 = sst [smem:[#allocation12_spill]] %s2585_s4 }
   0x6   :  { %2617 = sst [smem:[#allocation13_spill]] %s2586_s5 }
   0x7   :  { %2618 = sst [smem:[#allocation14_spill]] %s2587_s6 }
   0x8   :  { %18 = vsyncpa [#allocation5], 0 }
   0x9   :  { %20 = vsyncpa [#allocation5 + $0x1], 0  ;;  %s1974_s25 = smov 0   ;;  %s1976_s26 = smov 0  }
   0xa   :  { %s1978_s27 = smov 0   ;;  %s1980_s28 = smov 0  }
   0xb LB: > { %s1995_s29 = sadd.s32 4294967295, %s1890_s28   ;;  %s1715_s30 = sadd.s32 4294967294, %s1890_s28   ;;  %s1890_s28 = sphi %s1980_s28, %s2642_s28   ;;  %s1886_s27 = sphi %s1978_s27, %s2641_s27   ;;  %s1882_s26 = sphi %s1976_s26, %s2640_s26   ;;  %s1878_s25 = sphi %s1974_s25, %s2639_s25  }
   0xc   : > { %s1999_s14 = sadd.s32 1, %s1890_s28   ;;  %s311_s15 = sadd.s32 1, %s1886_s27 }
   0xd   : > { %s308_s16 = ssub.s32 %s1890_s28, %s1999_s14  ;;  %p321_p0 = scmp.ne.s32.totalorder %s1886_s27, %s1882_s26 }
   0xe   : > { %p309_p1 = scmp.eq.s32.totalorder %s308_s16, 0  ;;  %p322_p2 = scmp.eq.s32.totalorder %s1995_s29, 1 }
   0xf   : > { %p327_p3 = scmp.ne.s32.totalorder %s1882_s26, %s1878_s25  ;;  %p328_p4 = scmp.eq.s32.totalorder %s1715_s30, 1 }
  0x10   : > { %s2010_s17 = scalar_select %p309_p1, %s1886_s27, %s311_s15  }
  0x11   : > { %p2012_p5 = por %p322_p2, %p321_p0  ;;  %p2016_p6 = por %p328_p4, %p327_p3 }
  0x12   : > { %2619 = sst [smem:[#allocation7_spill]] %s2010_s17  ;;  %p1718_p7 = scmp.ge.s32.totalorder %s1890_s28, 1 }
  0x13   : > { %p390_p8 = scmp.lt.s32.totalorder %s1890_s28, 3 }
  0x15   : > { %p391_p9 = pnand %p1718_p7, %p390_p8 }
  0x16   : > { %s2622_s1 = sld [smem:[#allocation9_spill]] (!%p391_p9)  ;;  %s2595_s24 = sand.u32 (!%p391_p9), 1, %s1882_s26  }
  0x17   : > { %394 = sbr.rel (%p391_p9) target bundleno = 1291 (0x50b), region = 72  ;;  %s2623_s2 = sld [smem:[#allocation10_spill]] (!%p391_p9) }
  0x18   : > { %p434_p10 = scmp.lt.s32.totalorder (!%p391_p9), %s1995_s29, 1  ;;  %s1719_s30 = sshll.u32 (!%p391_p9), %s2595_s24, 5 }
  0x19   : > { %s2624_s0 = sld [smem:[#allocation8_spill]] (!%p391_p9)  ;;  %s2604_s23 = smov (!%p391_p9), 17  }
  0x1a   : > { %s2600_s24 = smov (!%p391_p9), 1   ;;  %s2598_s20 = smov (!%p391_p9), 127  }
  0x1b   : > { %s2602_s21 = smov (!%p391_p9), 112   ;;  %s2625_s3 = sld [smem:[#allocation11_spill]] (!%p391_p9) }
  0x1c   : > { %v494_v0 = vld [vmem:[%s2622_s1] sm:$0xf]  ;;  %v453_v1 = vlaneseq  ;;  %v1892_v2 = vmov 0   ;;  %v1893_v3 = vmov 0.0   ;;  %s435_s15 = scalar_select %p434_p10, %s1995_s29, 1  ;;  %vm540_vm4 = vcmask 138240  }
  0x1d   : > { %1786 = vset.pattern.permute.xlu0 %v1892_v2  ;;  %449 = vst [vmem:[#allocation2 + $0x20] sm:$0xf0] %v1893_v3  ;;  %450 = vst [vmem:[#allocation2 + $0x8] sm:$0xf0] %v1893_v3  ;;  %1817 = vset.pattern.permute.xlu1 %v1892_v2  ;;  %v502_v5 = vld [vmem:[%s2623_s2] sm:$0xf] }
  0x1e   : > { %451 = vst [vmem:[#allocation2 + $0x10] sm:$0xff] %v1893_v3  ;;  %452 = vst [vmem:[#allocation2 + $0x30] sm:$0xff] %v1893_v3  ;;  %497 = vperm.xlu0 %1786, %v494_v0   ;;  %v454_v4 = vand.u32 127, %v453_v1  ;;  %833 = vmatprep.mubr.f32.mxu1 %v1893_v3  ;;  %s1734_s16 = sshll.u32 %s435_s15, 3  ;;  %s2047_s1 = scalar_lea.vmem [#allocation4], %s1719_s30  ;;  %vm592_vm5 = vcmask 121856  }
  0x1f   : > { %s438_s22 = scalar_lea.vmem %s2624_s0, %s1734_s16  ;;  %s2610_s15 = smov 15   ;;  %vm606_vm6 = vcmask 1039360   ;;  %vm623_vm7 = vcmask 7168   ;;  %vm575_vm8 = vcmask 924672   ;;  %vm523_vm9 = vcmask 908288  }
  0x20   : > { %v455_v6 = vadd.s32 128, %v454_v4  ;;  %v460_v7 = vand.u32 15, %v454_v4  ;;  %v439_v14 = vld [vmem:[%s438_s22] sm:$0xff]  ;;  %s2608_s16 = smov 113   ;;  %s2606_s30 = smov 111   ;;  %vm704_vm10 = vcmask 916480  }
  0x21   : > { %v441_v16 = vcombine.high %v439_v14, %v439_v14  ;;  %443 = vst [vmem:[%s2047_s1] sm:$0xf] %v439_v14  ;;  %s2596_s22 = smov 16   ;;  %s2626_s6 = sld [smem:[#allocation14_spill]]  ;;  %vm559_vm11 = vcmask 130048   ;;  %vm765_vm12 = vcmask 588800  }
  0x22   : > { %505 = vperm.xlu0 %1786, %v502_v5   ;;  %v467_v8 = vand.u32 15, %v455_v6  ;;  %vm486_vm0 = vcmp.lt.s32.totalorder %v460_v7, 15  ;;  %vm480_vm1 = vcmp.ge.s32.totalorder %v460_v7, 1  ;;  %v759_v5 = vld [vmem:[%s2625_s3] sm:$0xf]  ;;  %s2627_s5 = sld [smem:[#allocation13_spill]] }
  0x23   : > { %v1724_v9 = vsel %vm486_vm0, 1.0, %v1893_v3  ;;  %v1722_v11 = vsel %vm480_vm1, 1.0, %v1893_v3  ;;  %444 = vst [vmem:[%s2047_s1 + $0x8] sm:$0xf] %v441_v16  ;;  %s2631_s4 = sld [smem:[#allocation12_spill]]  ;;  %s2635_s0 = smov 15  }
  0x24   : > { %vm487_vm2 = vcmp.lt.s32.totalorder %v467_v8, 15  ;;  %vm481_vm3 = vcmp.ge.s32.totalorder %v467_v8, 1  ;;  %s1902_s2 = smov [#allocation4]  }
  0x25   : > { %v1725_v10 = vsel %vm487_vm2, 1.0, %v1893_v3  ;;  %v1723_v12 = vsel %vm481_vm3, 1.0, %v1893_v3  ;;  %s1834_s3 = sshll.u32 %s1902_s2, 4  ;;  %s1835_s3 = int_to_ptr.vmem [resolvable:$false] %s1834_s3 }
  0x26   : > { %v1787_v13 = vpack.i.bf16 %v1725_v10, %v1724_v9  ;;  %v1792_v15 = vpack.i.bf16 %v1723_v12, %v1722_v11 }
  0x27   : > { %v858_v8 = vld [vmem:[%s2626_s6] sm:$0xff] }
  0x28   : > { %1788 = vrot.lane.b32.xlu1 %v1787_v13, %s2604_s23  ;;  %1798 = vrot.lane.b32.xlu0 %v1787_v13, %s2600_s24  ;;  %v492_v18 = vld [vmem:[%s2047_s1] sm:$0xf] }
  0x29   : > { %v850_v10 = vld [vmem:[%s2627_s5] sm:$0xff] }
  0x2a   : > { %v493_v19 = vld [vmem:[%s2047_s1 + $0x8] sm:$0xf] }
  0x2c   : > { %1793 = vrot.lane.b32.xlu1 %v1792_v15, %s2610_s15  ;;  %1808 = vrot.lane.b32.xlu0 %v1787_v13, %s2608_s16 }
  0x30   : > { %1803 = vrot.lane.b32.xlu1 %v1792_v15, %s2598_s20  ;;  %702 = vrot.lane.b32.xlu0 %v1893_v3, %s2602_s21 }
  0x34   : > { %1813 = vrot.lane.b32.xlu1 %v1792_v15, %s2606_s30  ;;  %553 = vrot.lane.b32.xlu0 %v1893_v3, %s2596_s22 }
  0x99   : > { %v498_v17 = vpop.permute.xlu0 %497 }
  0x9a   : > { %v1789_v20 = vpop.permute.xlu1 %1788  ;;  %v500_v21 = vmul.f32 %v498_v17, %v492_v18  ;;  %v501_v22 = vmul.f32 %v498_v17, %v493_v19 }
  0x9b   : > { %v1791_v36 = vunpack.i.h.bf16 %v1789_v20  ;;  %v2073_v39 = vunpack.i.l.bf16 %v1789_v20 }
  0x9d   : > { %v506_v23 = vpop.permute.xlu0 %505  ;;  %v2075_v40 = vmul.f32 0.0, %v1791_v36  ;;  %v2089_v45 = vsel %vm540_vm4, %v2073_v39, %v1791_v36 }
  0x9e   : > { %v508_v24 = vadd.f32 %v506_v23, %v500_v21  ;;  %v509_v25 = vadd.f32 %v506_v23, %v501_v22  ;;  %v1794_v26 = vpop.permute.xlu1 %1793 }
  0x9f   : > { %v1796_v41 = vunpack.i.h.bf16 %v1794_v26  ;;  %v2093_v47 = vunpack.i.l.bf16 %v1794_v26 }
  0xa0   : > { %v510_v27 = vmax.f32 %v508_v24, 0.0  ;;  %v511_v28 = vmax.f32 %v509_v25, 0.0 }
  0xa1   : > { %v1799_v29 = vpop.permute.xlu0 %1798  ;;  %v2085_v44 = vmul.f32 0.0, %v1796_v41  ;;  %v2104_v49 = vsel %vm592_vm5, %v2093_v47, %v1796_v41 }
  0xa2   : > { %512 = vst [vmem:[#allocation2 + $0x20] sm:$0xf] %v510_v27  ;;  %513 = vst [vmem:[#allocation2 + $0x8] sm:$0xf] %v511_v28  ;;  %v1804_v30 = vpop.permute.xlu1 %1803  ;;  %v1801_v32 = vunpack.i.h.bf16 %v1799_v29  ;;  %v2113_v52 = vunpack.i.l.bf16 %v1799_v29 }
  0xa3   : > { %v1805_v31 = vunpack.i.l.bf16 %v1804_v30  ;;  %v2109_v51 = vunpack.i.h.bf16 %v1804_v30 }
  0xa4   : > { %v2067_v38 = vmul.f32 0.0, %v1801_v32  ;;  %v2127_v55 = vsel %vm623_vm7, %v2113_v52, %v1801_v32 }
  0xa5   : > { %v1809_v33 = vpop.permute.xlu0 %1808  ;;  %v2061_v34 = vmul.f32 0.0, %v1805_v31  ;;  %v2122_v54 = vsel %vm606_vm6, %v1805_v31, %v2109_v51 }
  0xa6   : > { %v1810_v35 = vunpack.i.l.bf16 %v1809_v33  ;;  %v1814_v58 = vpop.permute.xlu1 %1813  ;;  %v2134_v59 = vunpack.i.h.bf16 %v1809_v33 }
  0xa7   : > { %617 = vrot.lane.b32.xlu0 %v2061_v34, %s2600_s24  ;;  %v2139_v61 = vunpack.i.h.bf16 %v1814_v58  ;;  %v1815_v0 = vunpack.i.l.bf16 %v1814_v58 }
  0xa8   : > { %v2065_v37 = vmul.f32 0.0, %v1810_v35  ;;  %v2151_v2 = vsel %vm575_vm8, %v1810_v35, %v2134_v59 }
  0xa9   : > { %v2079_v42 = vld [vmem:[#allocation2 + $0x20] sm:$0xff]  ;;  %v2081_v43 = vld [vmem:[#allocation2 + $0x8] sm:$0xff]  ;;  %v2162_v6 = vsel %vm523_vm9, %v1815_v0, %v2139_v61  ;;  %v2171_v9 = vmul.f32 0.0, %v1815_v0  ;;  %v703_v11 = vpop.permute.xlu0 %702 }
  0xaa   : > { %586 = vrot.lane.b32.xlu1 %v2065_v37, %s2610_s15  ;;  %v723_v46 = vmul.f32 %v2089_v45, %v2081_v43  ;;  %v722_v48 = vmul.f32 %v2073_v39, %v2079_v42  ;;  %v675_v50 = vmul.f32 %v2081_v43, %v2104_v49  ;;  %v674_v53 = vmul.f32 %v2093_v47, %v2079_v42 }
  0xab   : > { %655 = vrot.lane.b32.xlu0 %v2067_v38, %s2598_s20  ;;  %v646_v56 = vmul.f32 %v2081_v43, %v2127_v55  ;;  %v612_v57 = vmul.f32 %v2122_v54, %v2079_v42  ;;  %v645_v60 = vmul.f32 %v2113_v52, %v2079_v42  ;;  %v582_v62 = vmul.f32 %v2134_v59, %v2081_v43 }
  0xac   : > { %v613_v63 = vmul.f32 %v2109_v51, %v2081_v43  ;;  %v530_v1 = vmul.f32 %v2139_v61, %v2081_v43  ;;  %v581_v4 = vmul.f32 %v2151_v2, %v2079_v42  ;;  %v529_v7 = vmul.f32 %v2079_v42, %v2162_v6 }
  0xad   : > { %v554_v12 = vpop.permute.xlu0 %553 }
  0xae   : > { %732 = vrot.lane.b32.xlu1 %v2075_v40, %s2606_s30 }
  0xaf   : > { %555 = vrot.lane.b32.xlu0 %v2079_v42, %s2596_s22 }
  0xb2   : > { %684 = vrot.lane.b32.xlu1 %v2085_v44, %s2608_s16 }
  0xb3   : > { %730 = vrot.lane.b32.xlu0 %v723_v46, %s2606_s30 }
  0xb6   : > { %700 = vrot.lane.b32.xlu1 %v2081_v43, %s2602_s21 }
  0xb7   : > { %728 = vrot.lane.b32.xlu0 %v722_v48, %s2606_s30 }
  0xba   : > { %698 = vrot.lane.b32.xlu1 %v2079_v42, %s2602_s21  ;;  %s2629_s21 = smov 127  }
  0xbb   : > { %682 = vrot.lane.b32.xlu0 %v675_v50, %s2608_s16 }
  0xbe   : > { %557 = vrot.lane.b32.xlu1 %v2081_v43, %s2596_s22  ;;  %s2633_s22 = smov 17  }
  0xbf   : > { %680 = vrot.lane.b32.xlu0 %v674_v53, %s2608_s16 }
  0xc2   : > { %653 = vrot.lane.b32.xlu1 %v646_v56, %s2598_s20 }
  0xc3   : > { %619 = vrot.lane.b32.xlu0 %v612_v57, %s2600_s24 }
  0xc6   : > { %651 = vrot.lane.b32.xlu1 %v645_v60, %s2598_s20  ;;  %s2632_s20 = smov 16  }
  0xc7   : > { %590 = vrot.lane.b32.xlu0 %v582_v62, %s2610_s15 }
  0xca   : > { %621 = vrot.lane.b32.xlu1 %v613_v63, %s2600_s24  ;;  %s2628_s24 = smov 112  }
  0xcb   : > { %538 = vrot.lane.b32.xlu0 %v530_v1, %s2604_s23  ;;  %v740_v1 = vld [vmem:[%s2631_s4] sm:$0xf]  ;;  %s2636_s4 = smov 111  }
  0xce   : > { %588 = vrot.lane.b32.xlu1 %v581_v4, %s2610_s15 }
  0xcf   : > { %762 = vperm.xlu0 %1786, %v759_v5  }
  0xd2   : > { %536 = vrot.lane.b32.xlu1 %v529_v7, %s2604_s23 }
  0xd3   : > { %861 = vperm.xlu0 %1786, %v858_v8  }
  0xd6   : > { %534 = vrot.lane.b32.xlu1 %v2171_v9, %s2604_s23  ;;  %s2630_s23 = smov 1  }
  0xd7   : > { %1028 = vrot.lane.b32.xlu0 %v2075_v40, %s2606_s30 }
  0xda   : > { %853 = vperm.xlu1 %1817, %v850_v10  }
  0xdb   : > { %989 = vrot.lane.b32.xlu0 %v2085_v44, %s2608_s16 }
  0xde   : > { %1007 = vrot.lane.b32.xlu1 %v1893_v3, %s2628_s24 }
  0xdf   : > { %918 = vrot.lane.b32.xlu0 %v2065_v37, %s2610_s15 }
  0xe2   : > { %968 = vrot.lane.b32.xlu1 %v2067_v38, %s2629_s21 }
  0xe6   : > { %939 = vrot.lane.b32.xlu1 %v2061_v34, %s2630_s23 }
 0x119   : > { %v618_v13 = vpop.permute.xlu0 %617 }
 0x11c   : > { %v587_v14 = vpop.permute.xlu1 %586 }
 0x11d   : > { %v656_v15 = vpop.permute.xlu0 %655 }
 0x120   : > { %v733_v16 = vpop.permute.xlu1 %732 }
 0x121   : > { %v556_v17 = vpop.permute.xlu0 %555 }
 0x122   : > { %v560_v62 = vsel %vm559_vm11, %v554_v12, %v556_v17 }
 0x124   : > { %v685_v18 = vpop.permute.xlu1 %684 }
 0x125   : > { %v731_v19 = vpop.permute.xlu0 %730 }
 0x126   : > { %v735_v20 = vsel %vm523_vm9, %v731_v19, %v733_v16 }
 0x127   : > { %783 = vmatprep.subr.mxu1 %v735_v20 }
 0x128   : > { %v701_v21 = vpop.permute.xlu1 %700 }
 0x129   : > { %v729_v22 = vpop.permute.xlu0 %728  ;;  %v706_v24 = vsel %vm704_vm10, %v701_v21, %v703_v11 }
 0x12a   : > { %v734_v23 = vsel %vm523_vm9, %v729_v22, %v731_v19 }
 0x12b   : > { %784 = vmatpush1.msra.mxu1 %v734_v23 }
 0x12c   : > { %v699_v25 = vpop.permute.xlu1 %698  ;;  %785 = vmatprep.subr.mxu1 %v706_v24 }
 0x12d   : > { %v683_v26 = vpop.permute.xlu0 %682  ;;  %v705_v27 = vsel %vm704_vm10, %v699_v25, %v701_v21 }
 0x12e   : > { %786 = vmatpush1.msra.mxu1 %v705_v27  ;;  %v687_v28 = vsel %vm575_vm8, %v683_v26, %v685_v18 }
 0x12f   : > { %787 = vmatprep.subr.mxu1 %v687_v28 }
 0x130   : > { %v558_v29 = vpop.permute.xlu1 %557 }
 0x131   : > { %v681_v30 = vpop.permute.xlu0 %680 }
 0x132   : > { %v686_v31 = vsel %vm575_vm8, %v681_v30, %v683_v26 }
 0x133   : > { %788 = vmatpush1.msra.mxu1 %v686_v31 }
 0x134   : > { %v654_v32 = vpop.permute.xlu1 %653 }
 0x135   : > { %v658_v33 = vsel %vm606_vm6, %v654_v32, %v656_v15  ;;  %v620_v35 = vpop.permute.xlu0 %619 }
 0x136   : > { %789 = vmatprep.subr.mxu1 %v658_v33  ;;  %v624_v53 = vsel %vm623_vm7, %v618_v13, %v620_v35 }
 0x138   : > { %v652_v36 = vpop.permute.xlu1 %651 }
 0x139   : > { %v657_v41 = vsel %vm606_vm6, %v652_v36, %v654_v32  ;;  %v591_v50 = vpop.permute.xlu0 %590 }
 0x13a   : > { %790 = vmatpush1.msra.mxu1 %v657_v41  ;;  %v1055_v41 = vld [vmem:[%s2588_s7] sm:$0xf] }
 0x13b   : > { %791 = vmatprep.subr.mxu1 %v2081_v43  ;;  %v561_v43 = vsel %vm559_vm11, %v556_v17, %v558_v29 }
 0x13c   : > { %v622_v46 = vpop.permute.xlu1 %621  ;;  %792 = vmatpush1.msra.mxu1 %v2079_v42 }
 0x13d   : > { %v625_v48 = vsel %vm623_vm7, %v620_v35, %v622_v46  ;;  %v539_v60 = vpop.permute.xlu0 %538  ;;  %v1142_v46 = vld [vmem:[%s2590_s9 + $0x8] sm:$0xf] }
 0x13e   : > { %793 = vmatprep.subr.mxu1 %v625_v48  ;;  %v1141_v48 = vld [vmem:[%s2590_s9] sm:$0xff] }
 0x13f   : > { %794 = vmatpush1.msra.mxu1 %v624_v53  ;;  %v1157_v53 = vld [vmem:[%s2591_s10] sm:$0xff] }
 0x140   : > { %v589_v56 = vpop.permute.xlu1 %588 }
 0x141   : > { %v594_v57 = vsel %vm592_vm5, %v589_v56, %v591_v50  ;;  %v593_v58 = vsel %vm592_vm5, %v587_v14, %v589_v56  ;;  %v1158_v50 = vld [vmem:[%s2591_s10 + $0x8] sm:$0xf] }
 0x142   : > { %795 = vmatprep.subr.mxu1 %v594_v57 }
 0x143   : > { %796 = vmatpush1.msra.mxu1 %v593_v58 }
 0x144   : > { %797 = vmatprep.subr.mxu1 %v561_v43  ;;  %v537_v42 = vpop.permute.xlu1 %536 }
 0x145   : > { %798 = vmatpush1.msra.mxu1 %v560_v62  ;;  %v542_v63 = vsel %vm540_vm4, %v537_v42, %v539_v60 }
 0x146   : > { %799 = vmatprep.subr.mxu1 %v542_v63 }
 0x148   : > { %v535_v0 = vpop.permute.xlu1 %534 }
 0x149   : > { %v541_v4 = vsel %vm540_vm4, %v535_v0, %v537_v42 }
 0x14a   : > { %800 = vmatpush1.msra.mxu1 %v541_v4  ;;  %v763_v5 = vpop.permute.xlu0 %762 }
 0x14b   : > { %1726 = vmatmul.mubr.msk.f32.vlgmr.msra.gmra.mxu1 %vm765_vm12, %v740_v1 }
 0x14c   : > { %1128 = vmatprep.mubr.f32.mxu1 %v1893_v3 }
 0x14e   : > { %v862_v17 = vpop.permute.xlu0 %861 }
 0x152   : > { %v1029_v56 = vpop.permute.xlu0 %1028 }
 0x155   : > { %v854_v14 = vpop.permute.xlu1 %853 }
 0x156   : > { %v990_v57 = vpop.permute.xlu0 %989 }
 0x15a   : > { %v919_v43 = vpop.permute.xlu0 %918 }
 0x20b   : > { %v835_v7 = vpop.f32.mrf.mxu1 }
 0x20c   : > { %v836_v8 = vadd.f32 %v835_v7, %v763_v5 }
 0x20d   : > { %v837_v10 = vpop.f32.mrf.mxu1 }
 0x20e   : > { %v842_v11 = vrot.slane %v836_v8, 4  ;;  %v838_v12 = vadd.f32 %v837_v10, %v763_v5 }
 0x210   : > { %846 = vst [vmem:[%s2047_s1] sm:$0xf0] %v842_v11  ;;  %v843_v13 = vrot.slane %v838_v12, 4 }
 0x212   : > { %847 = vst [vmem:[%s2047_s1 + $0x8] sm:$0xf0] %v843_v13 }
 0x217   : > { %v2216_v15 = vld [vmem:[%s2047_s1] sm:$0xff] }
 0x218   : > { %v856_v16 = vmul.f32 %v854_v14, %v2216_v15 }
 0x219   : > { %v2220_v18 = vld [vmem:[%s2047_s1 + $0x8] sm:$0xff] }
 0x21a   : > { %v864_v19 = vadd.f32 %v862_v17, %v856_v16  ;;  %v857_v20 = vmul.f32 %v854_v14, %v2220_v18 }
 0x21c   : > { %v2223_v21 = vmax.f32 %v864_v19, 0.0  ;;  %v865_v22 = vadd.f32 %v862_v17, %v857_v20 }
 0x21e   : > { %1003 = vrot.lane.b32.xlu0 %v2223_v21, %s2628_s24  ;;  %899 = vrot.lane.b32.xlu1 %v2223_v21, %s2632_s20  ;;  %v2229_v23 = vmax.f32 %v865_v22, 0.0  ;;  %v1018_v24 = vmul.f32 %v2073_v39, %v2223_v21  ;;  %v958_v25 = vmul.f32 %v2113_v52, %v2223_v21  ;;  %v979_v26 = vmul.f32 %v2093_v47, %v2223_v21 }
 0x21f   : > { %v913_v27 = vmul.f32 %v2223_v21, %v2151_v2  ;;  %v934_v28 = vmul.f32 %v2223_v21, %v2122_v54  ;;  %v874_v35 = vmul.f32 %v2223_v21, %v2162_v6 }
 0x220   : > { %v1019_v29 = vmul.f32 %v2229_v23, %v2089_v45  ;;  %v959_v30 = vmul.f32 %v2229_v23, %v2127_v55  ;;  %v980_v31 = vmul.f32 %v2229_v23, %v2104_v49  ;;  %v935_v32 = vmul.f32 %v2109_v51, %v2229_v23 }
 0x221   : > { %v914_v33 = vmul.f32 %v2134_v59, %v2229_v23  ;;  %v875_v36 = vmul.f32 %v2139_v61, %v2229_v23 }
 0x222   : > { %1005 = vrot.lane.b32.xlu0 %v2229_v23, %s2628_s24  ;;  %1024 = vrot.lane.b32.xlu1 %v1018_v24, %s2606_s30 }
 0x226   : > { %964 = vrot.lane.b32.xlu0 %v958_v25, %s2629_s21  ;;  %985 = vrot.lane.b32.xlu1 %v979_v26, %s2608_s16 }
 0x22a   : > { %920 = vrot.lane.b32.xlu0 %v913_v27, %s2610_s15  ;;  %941 = vrot.lane.b32.xlu1 %v934_v28, %s2630_s23 }
 0x22e   : > { %901 = vrot.lane.b32.xlu0 %v2229_v23, %s2632_s20  ;;  %1026 = vrot.lane.b32.xlu1 %v1019_v29, %s2606_s30  ;;  %s1653_s30 = sshll.u32 %s2047_s1, 4  ;;  %s2535_s30 = int_to_ptr.vmem [resolvable:$true] %s1653_s30 }
 0x22f   : > { %p1837_p0 = scmp.lt.s32.totalorder %s2535_s30, %s1835_s3 }
 0x232   : > { %966 = vrot.lane.b32.xlu0 %v959_v30, %s2629_s21  ;;  %987 = vrot.lane.b32.xlu1 %v980_v31, %s2608_s16  ;;  %s2634_s16 = smov 113  }
 0x236   : > { %943 = vrot.lane.b32.xlu0 %v935_v32, %s2630_s23  ;;  %897 = vrot.lane.b32.xlu1 %v1893_v3, %s2632_s20 }
 0x23a   : > { %922 = vrot.lane.b32.xlu1 %v914_v33, %s2610_s15  ;;  %881 = vrot.lane.b32.xlu0 %v874_v35, %s2633_s22  ;;  %v1036_v33 = vld [vmem:[%s2589_s8] sm:$0xf]  ;;  %s1735_s15 = sshll.u32 %s1995_s29, 9  ;;  %s1830_s29 = scalar_lea.vmem %s2535_s30, 512 }
 0x23b   : > { %p1831_p11 = scmp.ne.s32.totalorder %s2535_s30, %s1830_s29 }
 0x23d   : > { %p1832_p12 = pnand %p1831_p11, %p2012_p5 }
 0x23e   : > { %883 = vrot.lane.b32.xlu1 %v875_v36, %s2633_s22  ;;  %879 = vrot.lane.b32.xlu0 %v2171_v9, %s2633_s22 }
 0x23f   : > { %p1833_p13 = pneg %p1832_p12 }
 0x242   : > { %1058 = vperm.xlu1 %1817, %v1055_v41   ;;  %1150 = vperm.xlu0 %1786, %v1142_v46  }
 0x246   : > { %1145 = vperm.xlu1 %1817, %v1141_v48   ;;  %1166 = vperm.xlu0 %1786, %v1158_v50  }
 0x24a   : > { %1161 = vperm.xlu1 %1817, %v1157_v53   ;;  %1421 = vrot.lane.b32.xlu0 %v2085_v44, %s2634_s16 }
 0x24e   : > { %1819 = vrot.lane.b32.xlu1 %v1893_v3, %s2628_s24  ;;  %1379 = vrot.lane.b32.xlu0 %v2067_v38, %s2629_s21 }
 0x252   : > { %1415 = vrot.lane.b32.xlu1 %v2085_v44, %s2634_s16  ;;  %1319 = vrot.lane.b32.xlu0 %v2061_v34, %s2630_s23  ;;  %v1008_v44 = vpop.permute.xlu1 %1007 }
 0x256   : > { %1373 = vrot.lane.b32.xlu1 %v2067_v38, %s2629_s21  ;;  %1277 = vrot.lane.b32.xlu0 %v2065_v37, %s2635_s0  ;;  %v969_v58 = vpop.permute.xlu1 %968 }
 0x25a   : > { %1325 = vrot.lane.b32.xlu1 %v2061_v34, %s2630_s23  ;;  %v940_v60 = vpop.permute.xlu1 %939 }
 0x25e   : > { %1283 = vrot.lane.b32.xlu1 %v2065_v37, %s2635_s0 }
 0x262   : > { %1824 = vrot.lane.b32.xlu1 %v1893_v3, %s2632_s20 }
 0x290   : > { %v1004_v42 = vpop.permute.xlu0 %1003  ;;  %v900_v38 = vpop.permute.xlu1 %899 }
 0x294   : > { %v1006_v62 = vpop.permute.xlu0 %1005  ;;  %v1025_v63 = vpop.permute.xlu1 %1024 }
 0x295   : > { %v1010_v8 = vsel %vm704_vm10, %v1006_v62, %v1008_v44  ;;  %v1009_v10 = vsel %vm704_vm10, %v1004_v42, %v1006_v62 }
 0x298   : > { %v965_v0 = vpop.permute.xlu0 %964  ;;  %v986_v1 = vpop.permute.xlu1 %985 }
 0x29c   : > { %v921_v4 = vpop.permute.xlu0 %920  ;;  %v942_v34 = vpop.permute.xlu1 %941 }
 0x29d   : > { %v945_v24 = vsel %vm623_vm7, %v940_v60, %v942_v34  ;;  %v924_v28 = vsel %vm592_vm5, %v919_v43, %v921_v4 }
 0x2a0   : > { %v902_v5 = vpop.permute.xlu0 %901  ;;  %v1027_v7 = vpop.permute.xlu1 %1026 }
 0x2a1   : > { %v1030_v37 = vsel %vm523_vm9, %v1025_v63, %v1027_v7  ;;  %v1031_v3 = vsel %vm523_vm9, %v1027_v7, %v1029_v56  ;;  %v904_v29 = vsel %vm559_vm11, %v900_v38, %v902_v5 }
 0x2a2   : > { %1078 = vmatprep.subr.mxu1 %v1031_v3 }
 0x2a3   : > { %1079 = vmatpush1.msra.mxu1 %v1030_v37 }
 0x2a4   : > { %v967_v11 = vpop.permute.xlu0 %966  ;;  %1080 = vmatprep.subr.mxu1 %v1010_v8  ;;  %v988_v12 = vpop.permute.xlu1 %987 }
 0x2a5   : > { %v991_v13 = vsel %vm575_vm8, %v986_v1, %v988_v12  ;;  %1081 = vmatpush1.msra.mxu1 %v1009_v10  ;;  %v992_v14 = vsel %vm575_vm8, %v988_v12, %v990_v57  ;;  %v971_v16 = vsel %vm606_vm6, %v967_v11, %v969_v58  ;;  %v970_v17 = vsel %vm606_vm6, %v965_v0, %v967_v11 }
 0x2a6   : > { %1082 = vmatprep.subr.mxu1 %v992_v14 }
 0x2a7   : > { %1083 = vmatpush1.msra.mxu1 %v991_v13 }
 0x2a8   : > { %v944_v19 = vpop.permute.xlu0 %943  ;;  %1084 = vmatprep.subr.mxu1 %v971_v16  ;;  %v898_v20 = vpop.permute.xlu1 %897 }
 0x2a9   : > { %1085 = vmatpush1.msra.mxu1 %v970_v17  ;;  %v946_v22 = vsel %vm623_vm7, %v942_v34, %v944_v19 }
 0x2aa   : > { %1086 = vmatprep.subr.mxu1 %v2229_v23  ;;  %v903_v23 = vsel %vm559_vm11, %v898_v20, %v900_v38 }
 0x2ab   : > { %1087 = vmatpush1.msra.mxu1 %v2223_v21 }
 0x2ac   : > { %v882_v25 = vpop.permute.xlu0 %881  ;;  %1088 = vmatprep.subr.mxu1 %v946_v22  ;;  %v923_v26 = vpop.permute.xlu1 %922 }
 0x2ad   : > { %1089 = vmatpush1.msra.mxu1 %v945_v24  ;;  %v925_v27 = vsel %vm592_vm5, %v921_v4, %v923_v26  ;;  %v1550_v24 = vld [vmem:[%s2592_s11] sm:$0xf] }
 0x2ae   : > { %1090 = vmatprep.subr.mxu1 %v925_v27 }
 0x2af   : > { %1091 = vmatpush1.msra.mxu1 %v924_v28 }
 0x2b0   : > { %v880_v30 = vpop.permute.xlu0 %879  ;;  %1092 = vmatprep.subr.mxu1 %v904_v29  ;;  %v884_v21 = vpop.permute.xlu1 %883 }
 0x2b1   : > { %v885_v31 = vsel %vm540_vm4, %v880_v30, %v882_v25  ;;  %1093 = vmatpush1.msra.mxu1 %v903_v23  ;;  %v886_v32 = vsel %vm540_vm4, %v882_v25, %v884_v21 }
 0x2b2   : > { %1094 = vmatprep.subr.mxu1 %v886_v32 }
 0x2b3   : > { %1095 = vmatpush1.msra.mxu1 %v885_v31 }
 0x2b4   : > { %1727 = vmatmul.mubr.msk.f32.vlgmr.msra.gmra.mxu1 %vm765_vm12, %v1036_v33 }
 0x2bd   : > { %v1059_v35 = vpop.permute.xlu1 %1058  ;;  %v1151_v4 = vpop.permute.xlu0 %1150 }
 0x2c1   : > { %v1146_v36 = vpop.permute.xlu1 %1145  ;;  %v1167_v7 = vpop.permute.xlu0 %1166 }
 0x2c2   : > { %v1153_v41 = vmul.f32 %v1146_v36, %v2216_v15  ;;  %v1154_v46 = vmul.f32 %v1146_v36, %v2220_v18 }
 0x2c5   : > { %v1162_v48 = vpop.permute.xlu1 %1161 }
 0x2c6   : > { %v1169_v50 = vadd.f32 %v1162_v48, %v1153_v41  ;;  %v1170_v53 = vadd.f32 %v1162_v48, %v1154_v46 }
 0x2c8   : > { %v2334_v56 = vmax.f32 %v1169_v50, 0.0  ;;  %v2336_v44 = vmax.f32 %v1170_v53, 0.0 }
 0x2ca   : > { %1177 = vst [vmem:[#allocation2 + $0x20] sm:$0xff] %v2334_v56  ;;  %1178 = vst [vmem:[#allocation2 + $0x8] sm:$0xff] %v2336_v44  ;;  %1449 = vrot.lane.b32.xlu1 %v2336_v44, %s2628_s24  ;;  %1447 = vrot.lane.b32.xlu0 %v2334_v56, %s2628_s24  ;;  %v1309_v15 = vmul.f32 %v2109_v51, %v2336_v44  ;;  %v1267_v18 = vmul.f32 %v2134_v59, %v2336_v44 }
 0x2cb   : > { %v1399_v57 = vmul.f32 %v2093_v47, %v2334_v56  ;;  %v1357_v58 = vmul.f32 %v2113_v52, %v2334_v56  ;;  %v1308_v43 = vmul.f32 %v2334_v56, %v2122_v54  ;;  %v1266_v60 = vmul.f32 %v2334_v56, %v2151_v2 }
 0x2cc   : > { %v1400_v42 = vmul.f32 %v2336_v44, %v2104_v49  ;;  %v1358_v38 = vmul.f32 %v2336_v44, %v2127_v55  ;;  %v1478_v26 = vmul.f32 %v2336_v44, %v2089_v45  ;;  %v1477_v27 = vmul.f32 %v2073_v39, %v2334_v56 }
 0x2ce   : > { %1323 = vrot.lane.b32.xlu1 %v1309_v15, %s2630_s23  ;;  %1237 = vrot.lane.b32.xlu0 %v2334_v56, %s2632_s20 }
 0x2d2   : > { %1281 = vrot.lane.b32.xlu1 %v1267_v18, %s2635_s0  ;;  %1411 = vrot.lane.b32.xlu0 %v1399_v57, %s2634_s16 }
 0x2d6   : > { %1369 = vrot.lane.b32.xlu0 %v1357_v58, %s2629_s21 }
 0x2da   : > { %1321 = vrot.lane.b32.xlu0 %v1308_v43, %s2630_s23 }
 0x2de   : > { %1279 = vrot.lane.b32.xlu0 %v1266_v60, %s2635_s0 }
 0x2e2   : > { %1413 = vrot.lane.b32.xlu0 %v1400_v42, %s2634_s16 }
 0x2e6   : > { %1371 = vrot.lane.b32.xlu0 %v1358_v38, %s2629_s21 }
 0x374   : > { %v1130_v62 = vpop.f32.mrf.mxu1 }
 0x375   : > { %v1131_v63 = vadd.f32 %v1130_v62, %v1059_v35 }
 0x376   : > { %v1132_v0 = vpop.f32.mrf.mxu1 }
 0x377   : > { %1135 = vst [vmem:[%s2047_s1 + $0x10] sm:$0xf] %v1131_v63  ;;  %v1133_v1 = vadd.f32 %v1132_v0, %v1059_v35 }
 0x379   : > { %1136 = vst [vmem:[%s2047_s1 + $0x18] sm:$0xf] %v1133_v1 }
 0x37e   : > { %v1139_v34 = vld [vmem:[%s2047_s1 + $0x10] sm:$0xf] }
 0x37f   : > { %v1155_v5 = vmul.f32 %v1151_v4, %v1139_v34 }
 0x380   : > { %v1140_v37 = vld [vmem:[%s2047_s1 + $0x18] sm:$0xf] }
 0x381   : > { %v1156_v3 = vmul.f32 %v1151_v4, %v1140_v37  ;;  %v1171_v8 = vadd.f32 %v1167_v7, %v1155_v5 }
 0x383   : > { %v1175_v10 = vmax.f32 %v1171_v8, 0.0  ;;  %v1172_v11 = vadd.f32 %v1167_v7, %v1156_v3 }
 0x385   : > { %1179 = vst [vmem:[#allocation2 + $0x10] sm:$0xf] %v1175_v10  ;;  %v1176_v12 = vmax.f32 %v1172_v11, 0.0 }
 0x387   : > { %1180 = vst [vmem:[#allocation2 + $0x30] sm:$0xf] %v1176_v12 }
 0x38c   : > { %v2374_v13 = vld [vmem:[#allocation2 + $0x10] sm:$0xff] }
 0x38d   : > { %1243 = vrot.lane.b32.xlu1 %v2374_v13, %s2632_s20  ;;  %1453 = vrot.lane.b32.xlu0 %v2374_v13, %s2628_s24  ;;  %v1402_v14 = vmul.f32 %v2093_v47, %v2374_v13  ;;  %v1360_v17 = vmul.f32 %v2113_v52, %v2374_v13  ;;  %v1311_v19 = vmul.f32 %v2374_v13, %v2122_v54 }
 0x38e   : > { %v2382_v16 = vld [vmem:[#allocation2 + $0x30] sm:$0xff]  ;;  %v1191_v47 = vmul.f32 %v2374_v13, %v2162_v6  ;;  %v1269_v20 = vmul.f32 %v2374_v13, %v2151_v2 }
 0x38f   : > { %v1403_v52 = vmul.f32 %v2382_v16, %v2104_v49  ;;  %v1312_v54 = vmul.f32 %v2109_v51, %v2382_v16  ;;  %v1361_v22 = vmul.f32 %v2382_v16, %v2127_v55  ;;  %v1270_v2 = vmul.f32 %v2134_v59, %v2382_v16 }
 0x390   : > { %v1189_v49 = vmul.f32 %v2139_v61, %v2336_v44  ;;  %v1480_v51 = vmul.f32 %v2073_v39, %v2374_v13  ;;  %v1188_v55 = vmul.f32 %v2334_v56, %v2162_v6  ;;  %v1481_v59 = vmul.f32 %v2382_v16, %v2089_v45  ;;  %v2438_v6 = vld [vmem:[%s2593_s12] sm:$0xff] }
 0x391   : > { %1417 = vrot.lane.b32.xlu1 %v1402_v14, %s2634_s16  ;;  %1455 = vrot.lane.b32.xlu0 %v2382_v16, %s2628_s24  ;;  %v1557_v25 = vcombine.high %v2438_v6, %v2438_v6 }
 0x393   : > { %1728 = vmatprep.mubr.msk.f32.mxu0 %vm559_vm11, %v1557_v25 }
 0x395   : > { %1375 = vrot.lane.b32.xlu1 %v1360_v17, %s2629_s21  ;;  %1245 = vrot.lane.b32.xlu0 %v2382_v16, %s2632_s20 }
 0x399   : > { %1327 = vrot.lane.b32.xlu1 %v1311_v19, %s2630_s23  ;;  %1207 = vrot.lane.b32.xlu0 %v1191_v47, %s2633_s22 }
 0x39d   : > { %1285 = vrot.lane.b32.xlu1 %v1269_v20, %s2635_s0  ;;  %1205 = vrot.lane.b32.xlu0 %v2171_v9, %s2633_s22 }
 0x3a1   : > { %1419 = vrot.lane.b32.xlu1 %v1403_v52, %s2634_s16  ;;  %1329 = vrot.lane.b32.xlu0 %v1312_v54, %s2630_s23  ;;  %s2637_s16 = sand.u32 1, %s1882_s26  }
 0x3a5   : > { %1377 = vrot.lane.b32.xlu1 %v1361_v22, %s2629_s21  ;;  %1287 = vrot.lane.b32.xlu0 %v1270_v2, %s2635_s0  ;;  %s2540_s0 = scalar_lea.sflag [#allocation5], %s2637_s16 }
 0x3a9   : > { %1239 = vrot.lane.b32.xlu1 %v2336_v44, %s2632_s20  ;;  %1203 = vrot.lane.b32.xlu0 %v1189_v49, %s2633_s22 }
 0x3ad   : > { %1495 = vrot.lane.b32.xlu0 %v1480_v51, %s2636_s4  ;;  %1201 = vrot.lane.b32.xlu1 %v1188_v55, %s2633_s22 }
 0x3b1   : > { %1497 = vrot.lane.b32.xlu0 %v1481_v59, %s2636_s4  ;;  %1199 = vrot.lane.b32.xlu1 %v2171_v9, %s2633_s22  ;;  %v1192_v9 = vmul.f32 %v2139_v61, %v2382_v16  ;;  %v1820_v61 = vpop.permute.xlu1 %1819 }
 0x3b2   : > { %v1822_v43 = vunpack.i.h.bf16 %v1820_v61  ;;  %v1821_v60 = vunpack.i.l.bf16 %v1820_v61 }
 0x3b5   : > { %1493 = vrot.lane.b32.xlu0 %v2075_v40, %s2636_s4  ;;  %1499 = vrot.lane.b32.xlu1 %v2075_v40, %s2636_s4  ;;  %v1422_v40 = vpop.permute.xlu0 %1421  ;;  %v1416_v21 = vpop.permute.xlu1 %1415 }
 0x3b9   : > { %1553 = vperm.xlu0 %1786, %v1550_v24   ;;  %1209 = vrot.lane.b32.xlu1 %v1192_v9, %s2633_s22  ;;  %v1380_v28 = vpop.permute.xlu0 %1379  ;;  %v1374_v32 = vpop.permute.xlu1 %1373  ;;  %s2532_s22 = scalar_lea.hbm %s2594_s13, %s1735_s15 }
 0x3bd   : > { %1491 = vrot.lane.b32.xlu1 %v1478_v26, %s2636_s4  ;;  %v2455_v29 = vpop.permute.xlu0 %1319  ;;  %v1326_v45 = vpop.permute.xlu1 %1325 }
 0x3c1   : > { %1489 = vrot.lane.b32.xlu1 %v1477_v27, %s2636_s4  ;;  %v2457_v23 = vpop.permute.xlu0 %1277  ;;  %v2461_v36 = vpop.permute.xlu1 %1283  ;;  %s1836_s4 = scalar_lea.vmem %s1835_s3, 1024 }
 0x3c2   : > { %p1838_p1 = scmp.lt.s32.totalorder %s1836_s4, %s1830_s29 }
 0x3c4   : > { %p1839_p2 = por %p1838_p1, %p1837_p0 }
 0x3c5   : > { %v1448_v30 = vpop.permute.xlu0 %1447  ;;  %v2463_v41 = vpop.permute.xlu1 %1824 }
 0x3c6   : > { %v1826_v26 = vunpack.i.l.bf16 %v2463_v41  ;;  %p1840_p3 = pnand %p1839_p2, %p1833_p13 }
 0x3c9   : > { %v2459_v31 = vpop.permute.xlu0 %1237  ;;  %v1450_v46 = vpop.permute.xlu1 %1449 }
 0x3ca   : > { %v1460_v0 = vsel %vm704_vm10, %v1450_v46, %v1822_v43  ;;  %v1459_v34 = vsel %vm704_vm10, %v1448_v30, %v1450_v46 }
 0x3cd   : > { %v1412_v33 = vpop.permute.xlu0 %1411  ;;  %v1324_v50 = vpop.permute.xlu1 %1323 }
 0x3d1   : > { %v1370_v35 = vpop.permute.xlu0 %1369  ;;  %v2467_v15 = vpop.permute.xlu1 %1281 }
 0x3d5   : > { %v1322_v39 = vpop.permute.xlu0 %1321 }
 0x3d6   : > { %v1332_v24 = vsel %vm623_vm7, %v1322_v39, %v1324_v50 }
 0x3d9   : > { %v2465_v48 = vpop.permute.xlu0 %1279 }
 0x3dd   : > { %v1414_v53 = vpop.permute.xlu0 %1413 }
 0x3de   : > { %v1424_v14 = vsel %vm575_vm8, %v1414_v53, %v1416_v21  ;;  %v1423_v19 = vsel %vm575_vm8, %v1412_v33, %v1414_v53 }
 0x3e1   : > { %v1372_v18 = vpop.permute.xlu0 %1371 }
 0x3e2   : > { %v1382_v54 = vsel %vm606_vm6, %v1372_v18, %v1374_v32  ;;  %v1381_v2 = vsel %vm606_vm6, %v1370_v35, %v1372_v18 }
 0x3ff   : > { %v1454_v57 = vpop.permute.xlu0 %1453  ;;  %v2469_v58 = vpop.permute.xlu1 %1243 }
 0x400   : > { %v1249_v61 = vsel %vm559_vm11, %v1826_v26, %v2469_v58 }
 0x403   : > { %v1456_v42 = vpop.permute.xlu0 %1455  ;;  %v1418_v38 = vpop.permute.xlu1 %1417 }
 0x404   : > { %v1462_v62 = vsel %vm704_vm10, %v1456_v42, %v1821_v60  ;;  %v1461_v63 = vsel %vm704_vm10, %v1454_v57, %v1456_v42 }
 0x405   : > { %1560 = vmatprep.subr.mxu0 %v1462_v62 }
 0x406   : > { %1561 = vmatpush1.msra.mxu0 %v1461_v63 }
 0x407   : > { %v1246_v1 = vpop.permute.xlu0 %1245  ;;  %v1376_v4 = vpop.permute.xlu1 %1375  ;;  %1562 = vmatprep.subr.mxu0 %v1460_v0 }
 0x408   : > { %1563 = vmatpush1.msra.mxu0 %v1459_v34 }
 0x40b   : > { %v2475_v5 = vpop.permute.xlu0 %1207  ;;  %v1328_v7 = vpop.permute.xlu1 %1327 }
 0x40c   : > { %v1333_v59 = vsel %vm623_vm7, %v1326_v45, %v1328_v7 }
 0x40f   : > { %v2477_v37 = vpop.permute.xlu0 %1205  ;;  %v1286_v3 = vpop.permute.xlu1 %1285 }
 0x410   : > { %v1213_v45 = vsel %vm540_vm4, %v2477_v37, %v2475_v5 }
 0x413   : > { %v1330_v8 = vpop.permute.xlu0 %1329  ;;  %v1420_v10 = vpop.permute.xlu1 %1419 }
 0x414   : > { %v1426_v11 = vsel %vm575_vm8, %v1420_v10, %v1422_v40  ;;  %v1425_v12 = vsel %vm575_vm8, %v1418_v38, %v1420_v10  ;;  %v1334_v55 = vsel %vm623_vm7, %v1328_v7, %v1330_v8  ;;  %v1827_v40 = vunpack.i.h.bf16 %v2463_v41 }
 0x415   : > { %1564 = vmatprep.subr.mxu0 %v1426_v11 }
 0x416   : > { %1565 = vmatpush1.msra.mxu0 %v1425_v12  ;;  %v1247_v33 = vsel %vm559_vm11, %v1827_v40, %v2459_v31 }
 0x417   : > { %v1378_v17 = vpop.permute.xlu1 %1377  ;;  %1566 = vmatprep.subr.mxu0 %v1424_v14  ;;  %v1288_v52 = vpop.permute.xlu0 %1287 }
 0x418   : > { %1567 = vmatpush1.msra.mxu0 %v1423_v19  ;;  %v1384_v47 = vsel %vm606_vm6, %v1378_v17, %v1380_v28  ;;  %v1383_v20 = vsel %vm606_vm6, %v1376_v4, %v1378_v17  ;;  %v1289_v28 = vsel %vm592_vm5, %v2457_v23, %v2465_v48 }
 0x419   : > { %1568 = vmatprep.subr.mxu0 %v1384_v47 }
 0x41a   : > { %1569 = vmatpush1.msra.mxu0 %v1383_v20 }
 0x41b   : > { %v1240_v22 = vpop.permute.xlu1 %1239  ;;  %1570 = vmatprep.subr.mxu0 %v1382_v54  ;;  %v1204_v49 = vpop.permute.xlu0 %1203 }
 0x41c   : > { %1571 = vmatpush1.msra.mxu0 %v1381_v2  ;;  %v1248_v30 = vsel %vm559_vm11, %v2459_v31, %v1240_v22 }
 0x41d   : > { %1572 = vmatprep.subr.mxu0 %v2382_v16  ;;  %v1331_v16 = vsel %vm623_vm7, %v2455_v29, %v1322_v39  ;;  %v1250_v29 = vsel %vm559_vm11, %v2469_v58, %v1246_v1 }
 0x41e   : > { %1573 = vmatpush1.msra.mxu0 %v2374_v13  ;;  %v1292_v13 = vsel %vm592_vm5, %v1286_v3, %v1288_v52 }
 0x41f   : > { %v1202_v51 = vpop.permute.xlu1 %1201  ;;  %1574 = vmatprep.subr.mxu0 %v2336_v44  ;;  %v1496_v9 = vpop.permute.xlu0 %1495  ;;  %v1290_v44 = vsel %vm592_vm5, %v2465_v48, %v2467_v15 }
 0x420   : > { %1575 = vmatpush1.msra.mxu0 %v2334_v56  ;;  %v1291_v56 = vsel %vm592_vm5, %v2461_v36, %v1286_v3  ;;  %v1212_v35 = vsel %vm540_vm4, %v1202_v51, %v1204_v49 }
 0x421   : > { %1576 = vmatprep.subr.mxu0 %v1334_v55 }
 0x422   : > { %1577 = vmatpush1.msra.mxu0 %v1333_v59 }
 0x423   : > { %v1200_v25 = vpop.permute.xlu1 %1199  ;;  %1578 = vmatprep.subr.mxu0 %v1332_v24  ;;  %v1498_v21 = vpop.permute.xlu0 %1497 }
 0x424   : > { %1579 = vmatpush1.msra.mxu0 %v1331_v16  ;;  %v1211_v41 = vsel %vm540_vm4, %v1200_v25, %v1202_v51  ;;  %v1503_v46 = vsel %vm523_vm9, %v1496_v9, %v1498_v21 }
 0x425   : > { %1580 = vmatprep.subr.mxu0 %v1292_v13 }
 0x426   : > { %1581 = vmatpush1.msra.mxu0 %v1291_v56 }
 0x427   : > { %v1500_v27 = vpop.permute.xlu1 %1499  ;;  %1582 = vmatprep.subr.mxu0 %v1290_v44  ;;  %v1494_v39 = vpop.permute.xlu0 %1493 }
 0x428   : > { %1583 = vmatpush1.msra.mxu0 %v1289_v28  ;;  %v1504_v31 = vsel %vm523_vm9, %v1498_v21, %v1500_v27 }
 0x429   : > { %1584 = vmatprep.subr.mxu0 %v1250_v29 }
 0x42a   : > { %1585 = vmatpush1.msra.mxu0 %v1249_v61 }
 0x42b   : > { %v1210_v32 = vpop.permute.xlu1 %1209  ;;  %1586 = vmatprep.subr.mxu0 %v1248_v30 }
 0x42c   : > { %1587 = vmatpush1.msra.mxu0 %v1247_v33  ;;  %v1214_v23 = vsel %vm540_vm4, %v2475_v5, %v1210_v32 }
 0x42d   : > { %1588 = vmatprep.subr.mxu0 %v1214_v23 }
 0x42e   : > { %1589 = vmatpush1.msra.mxu0 %v1213_v45 }
 0x42f   : > { %v1492_v36 = vpop.permute.xlu1 %1491  ;;  %1590 = vmatprep.subr.mxu0 %v1212_v35 }
 0x430   : > { %1591 = vmatpush1.msra.mxu0 %v1211_v41  ;;  %v1502_v48 = vsel %vm523_vm9, %v1492_v36, %v1494_v39 }
 0x431   : > { %1620 = vmatprep.subr.mxu0 %v1504_v31 }
 0x432   : > { %1621 = vmatpush2.msra.mxu0 %v1503_v46 }
 0x433   : > { %v1490_v50 = vpop.permute.xlu1 %1489  ;;  %1622 = vmatprep.subr.mxu0 %v1502_v48 }
 0x434   : > { %v1501_v53 = vsel %vm523_vm9, %v1490_v50, %v1492_v36  ;;  %v1554_v15 = vpop.permute.xlu0 %1553 }
 0x435   : > { %1623 = vmatpush2.msra.mxu0 %v1501_v53 }
 0x436   : > { %1625 = vmatmul.mubr.f32.vlgmr.msra.gmra.mxu0 %v2438_v6 }
 0x4f6   : > { %v1626_v18 = vpop.f32.mrf.mxu0 }
 0x4f7   : > { %v1627_v57 = vadd.f32 %v1626_v18, %v1554_v15 }
 0x4f8   : > { %v1628_v58 = vpop.f32.mrf.mxu0 }
 0x4f9   : > { %v1633_v43 = vrot.slane %v1627_v57, 4  ;;  %v1629_v60 = vadd.f32 %v1628_v58, %v1554_v15 }
 0x4fb   : > { %1637 = vst [vmem:[%s2047_s1 + $0x10] sm:$0xf0] %v1633_v43  ;;  %v1634_v42 = vrot.slane %v1629_v60, 4 }
 0x4fd   : > { %1638 = vst [vmem:[%s2047_s1 + $0x18] sm:$0xf0] %v1634_v42 }
 0x4fe   : > { %1843 = shalt.err (!%p1840_p3)
}
 0x4ff   : > { %s1844_s1 = scalar_lea.hbm %s2532_s22, 512  ;;  %s1848_s17 = scalar_lea.hbm %s2594_s13, 1024 }
 0x500   : > { %p1845_p4 = scmp.ne.s32.totalorder %s2532_s22, %s1844_s1  ;;  %p1849_p9 = scmp.lt.s32.totalorder %s2532_s22, %s2594_s13 }
 0x501   : > { %p1850_p10 = scmp.lt.s32.totalorder %s1848_s17, %s1844_s1 }
 0x502   : > { %p1846_p7 = pnand %p1845_p4, %p2012_p5 }
 0x503   : > { %p1851_p11 = por %p1850_p10, %p1849_p9 }
 0x504   : > { %p1847_p8 = pneg %p1846_p7 }
 0x506   : > { %p1852_p12 = pnand %p1851_p11, %p1847_p8 }
 0x508   : > { %1855 = shalt.err (!%p1852_p12)
}
 0x509   : > { %s1903_s24 = smov 256  }
 0x50a   : > { %1736 = dma.vmem_to_hbm [thread:$0]  (%p2012_p5), %s2535_s30, 512, %s2532_s22, %s2540_s0, %s1903_s24, %s1903_s24, %s2632_s20  }
 0x50b PF: > { %p1742_p13 = scmp.ge.s32.totalorder %s1890_s28, 2  ;;  %s1668_s21 = sand.u32 1, %s1878_s25  }
 0x50c   : > { %s1669_s16 = scalar_lea.sflag [#allocation5], %s1668_s21 }
 0x50d   : > { %p1739_p0 = pnand %p1742_p13, %p2016_p6 }
 0x50f   : > { %p1740_p1 = pneg %p1739_p0 }
 0x511   : > { %1873 = dma.done.wait (%p1740_p1), %s1669_s16, 512  }
 0x512   : > { %1875 = vsyncadd (%p1740_p1), %s1669_s16, 4294966784  ;;  %s2638_s18 = sld [smem:[#allocation7_spill]]  ;;  %p23_p2 = scmp.ge.s32.totalorder %s1999_s14, 4  }
 0x513   : > { %s2639_s25 = smov %s1882_s26  ;;  %s2640_s26 = smov %s1886_s27 }
 0x514   : > { %s2642_s28 = smov %s1999_s14  ;;  %25 = sbr.rel (!%p23_p2) target bundleno = 11 (0xb), region = 107 }
 0x518   : > { %s2641_s27 = smov %s2638_s18 }
 0x519   :  { %1674 = vsyncpa [#allocation5], 1 }
 0x51a   :  { %1676 = vsyncpa [#allocation5 + $0x1], 1 }

</bundles_post_ra>
